<compile_context>
chip_gen: v7x
topology: tpu7x:2x2x1
jax: 0.10.0
libtpu: 0.0.40
codegen_flags: <defaults>
</compile_context>

<pallas_src>
import jax
import jax.numpy as jnp
from jax.experimental import pallas as pl
from jax.experimental.pallas import tpu as pltpu


def _block1d_kernel(xp_ref, mp_ref, w_ref, b_ref, g_ref, o_ref):
    # xp_ref: (TB, T + 2*pad, Cin)   padded, channels-last input
    # mp_ref: (TB, T + 2*pad, 1)     padded mask
    # w_ref : (K, Cin, Cout)         per-tap weights
    # b_ref : (1, Cout)              conv bias
    # g_ref : (1, Cout)              rmsnorm gamma * sqrt(Cout)
    # o_ref : (TB, T, Cout)
    K, cin, cout = w_ref.shape
    tb, tpad, _ = xp_ref.shape
    pad = K // 2
    t = tpad - 2 * pad

    mpv = mp_ref[...].astype(jnp.float32)                 # (TB, Tp, 1)
    xm = xp_ref[...].astype(jnp.float32) * mpv            # input masking (x * mask)

    # Conv1d as K shifted tall matmuls, accumulated in f32 on the MXU.
    acc = jnp.zeros((tb * t, cout), jnp.float32)
    for k in range(K):                                    # static unroll (K = 3)
        xk = xm[:, k:k + t, :].reshape(tb * t, cin)
        acc = acc + jnp.dot(
            xk,
            w_ref[k].astype(jnp.float32),
            preferred_element_type=jnp.float32,
            precision=jax.lax.Precision.HIGHEST,
        )
    acc = acc + b_ref[...].astype(jnp.float32)

    # RMSNorm over channels: F.normalize(dim=-1) * sqrt(Cout) * gamma
    norm = jnp.sqrt(jnp.sum(acc * acc, axis=-1, keepdims=True))
    z = acc / jnp.maximum(norm, 1e-12)
    z = z * g_ref[...].astype(jnp.float32)

    # SiLU
    z = z * (1.0 / (1.0 + jnp.exp(-z)))

    # Output masking (output * mask)
    z = z.reshape(tb, t, cout) * mpv[:, pad:pad + t, :]
    o_ref[...] = z.astype(o_ref.dtype)


def block1d_forward(x, mask, weight, bias, gamma, *, block_batch=8):
    """Pallas Block1D.forward (default rmsnorm path, utt_emb=None).

    x:      (B, Cin, T)     mask: (B, 1, T)
    weight: (Cout, Cin, K)  bias: (Cout,)   gamma: (Cout,)  RMSNorm gain
    returns (B, Cout, T) in x.dtype
    """
    B, Cin, T = x.shape
    Cout, Cin2, K = weight.shape
    assert Cin2 == Cin
    pad = K // 2
    Tp = T + 2 * pad

    # Channels-last layout + zero padding of the time axis for 'same' conv.
    xt = jnp.swapaxes(x, 1, 2)                            # (B, T, Cin)
    mt = jnp.swapaxes(mask, 1, 2).astype(x.dtype)         # (B, T, 1)
    xp = jnp.pad(xt, ((0, 0), (pad, pad), (0, 0)))
    mp = jnp.pad(mt, ((0, 0), (pad, pad), (0, 0)))

    wk = jnp.transpose(weight, (2, 1, 0))                 # (K, Cin, Cout)
    b2 = bias.reshape(1, Cout)
    g2 = (gamma.astype(jnp.float32) * jnp.sqrt(jnp.float32(Cout))).reshape(1, Cout)

    # Batch TB planes per grid step (keeps >= 2 steps for megacore sharding).
    TB = max(1, min(block_batch, B))
    Bp = ((B + TB - 1) // TB) * TB
    if Bp != B:
        xp = jnp.pad(xp, ((0, Bp - B), (0, 0), (0, 0)))
        mp = jnp.pad(mp, ((0, Bp - B), (0, 0), (0, 0)))

    out = pl.pallas_call(
        _block1d_kernel,
        out_shape=jax.ShapeDtypeStruct((Bp, T, Cout), x.dtype),
        grid=(Bp // TB,),
        in_specs=[
            pl.BlockSpec((TB, Tp, Cin), lambda i: (i, 0, 0)),
            pl.BlockSpec((TB, Tp, 1), lambda i: (i, 0, 0)),
            pl.BlockSpec((K, Cin, Cout), lambda i: (0, 0, 0)),
            pl.BlockSpec((1, Cout), lambda i: (0, 0)),
            pl.BlockSpec((1, Cout), lambda i: (0, 0)),
        ],
        out_specs=pl.BlockSpec((TB, T, Cout), lambda i: (i, 0, 0)),
        compiler_params=pltpu.CompilerParams(
            dimension_semantics=("parallel",)),
    )(xp, mp, wk, b2, g2)

    out = out[:B]                                         # drop batch padding
    return jnp.swapaxes(out, 1, 2)                        # back to (B, Cout, T)


def _reference(x, mask, weight, bias, gamma):
    """Pure-JAX reference matching Block1D.forward (rmsnorm, dropout=0)."""
    B, Cin, T = x.shape
    Cout, _, K = weight.shape
    pad = K // 2

    xm = x * mask
    xt = jnp.swapaxes(xm, 1, 2)                           # (B, T, Cin)
    xp = jnp.pad(xt, ((0, 0), (pad, pad), (0, 0)))
    y = jnp.zeros((B, T, Cout), jnp.float32)
    for k in range(K):
        y = y + jnp.einsum(
            "btc,cd->btd",
            xp[:, k:k + T, :].astype(jnp.float32),
            weight[:, :, k].T.astype(jnp.float32),
            precision=jax.lax.Precision.HIGHEST,
        )
    y = y + bias[None, None, :]

    norm = jnp.sqrt(jnp.sum(y * y, axis=-1, keepdims=True))
    z = y / jnp.maximum(norm, 1e-12)
    z = z * (gamma * jnp.sqrt(jnp.float32(Cout)))[None, None, :]
    z = z * (1.0 / (1.0 + jnp.exp(-z)))                   # SiLU
    z = z * jnp.swapaxes(mask, 1, 2)
    return jnp.swapaxes(z, 1, 2).astype(x.dtype)


if __name__ == "__main__":
    key = jax.random.PRNGKey(0)
    B, Cin, Cout, T, K = 4, 64, 128, 64, 3
    k1, k2, k3 = jax.random.split(key, 3)

    x = jax.random.normal(k1, (B, Cin, T), dtype=jnp.float32)
    weight = jax.random.normal(k2, (Cout, Cin, K), dtype=jnp.float32) * 0.05
    bias = jax.random.normal(k3, (Cout,), dtype=jnp.float32) * 0.1
    gamma = jnp.ones((Cout,), dtype=jnp.float32)          # RMSNorm.g default init

    lengths = jnp.array([T, 48, 32, 56])
    mask = (jnp.arange(T)[None, None, :] < lengths[:, None, None]).astype(jnp.float32)

    out = block1d_forward(x, mask, weight, bias, gamma, block_batch=2)
    out = jax.block_until_ready(out)

    ref = _reference(x, mask, weight, bias, gamma)
    assert out.shape == ref.shape, (out.shape, ref.shape)
    assert out.dtype == ref.dtype, (out.dtype, ref.dtype)
    assert jnp.allclose(out, ref, atol=1e-4, rtol=1e-4), float(
        jnp.max(jnp.abs(out - ref)))

    print("KERNEL_OK")
</pallas_src>

<mosaic_0001>
module attributes {stable_mosaic.version = 11 : i64} {
  func.func @_block1d_kernel(%arg0: i32, %arg1: memref<2x66x64xf32, #tpu.memory_space<vmem>>, %arg2: memref<2x66x1xf32, #tpu.memory_space<vmem>>, %arg3: memref<3x64x128xf32, #tpu.memory_space<vmem>>, %arg4: memref<1x128xf32, #tpu.memory_space<vmem>>, %arg5: memref<1x128xf32, #tpu.memory_space<vmem>>, %arg6: memref<2x64x128xf32, #tpu.memory_space<vmem>>) attributes {dimension_semantics = [#tpu.dimension_semantics<parallel>], iteration_bounds = array<i64: 2>, scalar_prefetch = 0 : i64, scratch_operands = 0 : i64, tpu.core_type = #tpu.core_type<tc>, window_params = [{transform_indices = @transform_0, window_bounds = array<i64: 2, 66, 64>}, {transform_indices = @transform_1, window_bounds = array<i64: 2, 66, 1>}, {pipeline_mode = #tpu.pipeline_mode<synchronous>, transform_indices = @transform_2, window_bounds = array<i64: 3, 64, 128>}, {pipeline_mode = #tpu.pipeline_mode<synchronous>, transform_indices = @transform_3, window_bounds = array<i64: 1, 128>}, {pipeline_mode = #tpu.pipeline_mode<synchronous>, transform_indices = @transform_4, window_bounds = array<i64: 1, 128>}, {transform_indices = @transform_5, window_bounds = array<i64: 2, 64, 128>}]} {
    %c0 = arith.constant 0 : index
    %c0_0 = arith.constant 0 : index
    %c0_1 = arith.constant 0 : index
    %0 = vector.load %arg2[%c0, %c0_0, %c0_1] : memref<2x66x1xf32, #tpu.memory_space<vmem>>, vector<2x66x1xf32>
    %c0_2 = arith.constant 0 : index
    %c0_3 = arith.constant 0 : index
    %c0_4 = arith.constant 0 : index
    %1 = vector.load %arg1[%c0_2, %c0_3, %c0_4] : memref<2x66x64xf32, #tpu.memory_space<vmem>>, vector<2x66x64xf32>
    %2 = vector.broadcast %0 : vector<2x66x1xf32> to vector<2x66x64xf32>
    %3 = arith.mulf %1, %2 : vector<2x66x64xf32>
    %cst = arith.constant 0.000000e+00 : f32
    %4 = vector.broadcast %cst : f32 to vector<128x128xf32>
    %5 = vector.extract_strided_slice %3 {offsets = [0, 0, 0], sizes = [2, 64, 64], strides = [1, 1, 1]} : vector<2x66x64xf32> to vector<2x64x64xf32>
    %6 = vector.shape_cast %5 : vector<2x64x64xf32> to vector<128x64xf32>
    %c0_5 = arith.constant 0 : index
    %c0_6 = arith.constant 0 : index
    %c0_7 = arith.constant 0 : index
    %7 = vector.load %arg3[%c0_5, %c0_6, %c0_7] : memref<3x64x128xf32, #tpu.memory_space<vmem>>, vector<1x64x128xf32>
    %8 = vector.shape_cast %7 : vector<1x64x128xf32> to vector<64x128xf32>
    %cst_8 = arith.constant dense<0.000000e+00> : vector<128x128xf32>
    %9 = tpu.matmul %6, %8, %cst_8 {dimension_numbers = #tpu.dot_dimension_numbers<[1], [0], [0], [1], [0, 0, 1, 1], [], []>, precision = #tpu.contract_precision<fp32>} : vector<128x64xf32>, vector<64x128xf32>, vector<128x128xf32> -> vector<128x128xf32>
    %10 = arith.addf %4, %9 : vector<128x128xf32>
    %11 = vector.extract_strided_slice %3 {offsets = [0, 1, 0], sizes = [2, 64, 64], strides = [1, 1, 1]} : vector<2x66x64xf32> to vector<2x64x64xf32>
    %12 = vector.shape_cast %11 : vector<2x64x64xf32> to vector<128x64xf32>
    %c1 = arith.constant 1 : index
    %c0_9 = arith.constant 0 : index
    %c0_10 = arith.constant 0 : index
    %13 = vector.load %arg3[%c1, %c0_9, %c0_10] : memref<3x64x128xf32, #tpu.memory_space<vmem>>, vector<1x64x128xf32>
    %14 = vector.shape_cast %13 : vector<1x64x128xf32> to vector<64x128xf32>
    %cst_11 = arith.constant dense<0.000000e+00> : vector<128x128xf32>
    %15 = tpu.matmul %12, %14, %cst_11 {dimension_numbers = #tpu.dot_dimension_numbers<[1], [0], [0], [1], [0, 0, 1, 1], [], []>, precision = #tpu.contract_precision<fp32>} : vector<128x64xf32>, vector<64x128xf32>, vector<128x128xf32> -> vector<128x128xf32>
    %16 = arith.addf %10, %15 : vector<128x128xf32>
    %17 = vector.extract_strided_slice %3 {offsets = [0, 2, 0], sizes = [2, 64, 64], strides = [1, 1, 1]} : vector<2x66x64xf32> to vector<2x64x64xf32>
    %18 = vector.shape_cast %17 : vector<2x64x64xf32> to vector<128x64xf32>
    %c2 = arith.constant 2 : index
    %c0_12 = arith.constant 0 : index
    %c0_13 = arith.constant 0 : index
    %19 = vector.load %arg3[%c2, %c0_12, %c0_13] : memref<3x64x128xf32, #tpu.memory_space<vmem>>, vector<1x64x128xf32>
    %20 = vector.shape_cast %19 : vector<1x64x128xf32> to vector<64x128xf32>
    %cst_14 = arith.constant dense<0.000000e+00> : vector<128x128xf32>
    %21 = tpu.matmul %18, %20, %cst_14 {dimension_numbers = #tpu.dot_dimension_numbers<[1], [0], [0], [1], [0, 0, 1, 1], [], []>, precision = #tpu.contract_precision<fp32>} : vector<128x64xf32>, vector<64x128xf32>, vector<128x128xf32> -> vector<128x128xf32>
    %22 = arith.addf %16, %21 : vector<128x128xf32>
    %c0_15 = arith.constant 0 : index
    %c0_16 = arith.constant 0 : index
    %23 = vector.load %arg4[%c0_15, %c0_16] : memref<1x128xf32, #tpu.memory_space<vmem>>, vector<1x128xf32>
    %24 = vector.broadcast %23 : vector<1x128xf32> to vector<128x128xf32>
    %25 = arith.addf %22, %24 : vector<128x128xf32>
    %26 = arith.mulf %25, %25 : vector<128x128xf32>
    %cst_17 = arith.constant dense<0.000000e+00> : vector<128xf32>
    %27 = vector.multi_reduction <add>, %26, %cst_17 [1] : vector<128x128xf32> to vector<128xf32>
    %28 = vector.shape_cast %27 : vector<128xf32> to vector<128x1xf32>
    %29 = math.sqrt %28 : vector<128x1xf32>
    %cst_18 = arith.constant 9.99999996E-13 : f32
    %30 = vector.broadcast %cst_18 : f32 to vector<128x1xf32>
    %31 = arith.maximumf %29, %30 : vector<128x1xf32>
    %32 = vector.broadcast %31 : vector<128x1xf32> to vector<128x128xf32>
    %33 = arith.divf %25, %32 : vector<128x128xf32>
    %c0_19 = arith.constant 0 : index
    %c0_20 = arith.constant 0 : index
    %34 = vector.load %arg5[%c0_19, %c0_20] : memref<1x128xf32, #tpu.memory_space<vmem>>, vector<1x128xf32>
    %35 = vector.broadcast %34 : vector<1x128xf32> to vector<128x128xf32>
    %36 = arith.mulf %33, %35 : vector<128x128xf32>
    %cst_21 = arith.constant 0.000000e+00 : f32
    %37 = vector.broadcast %cst_21 : f32 to vector<128x128xf32>
    %38 = arith.subf %37, %36 : vector<128x128xf32>
    %39 = math.exp %38 : vector<128x128xf32>
    %cst_22 = arith.constant 1.000000e+00 : f32
    %40 = vector.broadcast %cst_22 : f32 to vector<128x128xf32>
    %41 = arith.addf %40, %39 : vector<128x128xf32>
    %cst_23 = arith.constant 1.000000e+00 : f32
    %42 = vector.broadcast %cst_23 : f32 to vector<128x128xf32>
    %43 = arith.divf %42, %41 : vector<128x128xf32>
    %44 = arith.mulf %36, %43 : vector<128x128xf32>
    %45 = vector.shape_cast %44 : vector<128x128xf32> to vector<2x64x128xf32>
    %46 = vector.extract_strided_slice %0 {offsets = [0, 1, 0], sizes = [2, 64, 1], strides = [1, 1, 1]} : vector<2x66x1xf32> to vector<2x64x1xf32>
    %47 = vector.broadcast %46 : vector<2x64x1xf32> to vector<2x64x128xf32>
    %48 = arith.mulf %45, %47 : vector<2x64x128xf32>
    %c0_24 = arith.constant 0 : index
    %c0_25 = arith.constant 0 : index
    %c0_26 = arith.constant 0 : index
    %49 = vector.load %arg6[%c0_24, %c0_25, %c0_26] : memref<2x64x128xf32, #tpu.memory_space<vmem>>, vector<2x64x128xf32>
    tpu.vector_store %arg6[%c0_24, %c0_25, %c0_26], %48 {strides = array<i32>} : memref<2x64x128xf32, #tpu.memory_space<vmem>>, vector<2x64x128xf32>,
    return
  }
  func.func @transform_0(%arg0: i32) -> (i32, i32, i32) {
    %c0_i32 = arith.constant 0 : i32
    %c0_i32_0 = arith.constant 0 : i32
    %c0_i32_1 = arith.constant 0 : i32
    return %arg0, %c0_i32, %c0_i32_0 : i32, i32, i32
  }
  func.func @transform_1(%arg0: i32) -> (i32, i32, i32) {
    %c0_i32 = arith.constant 0 : i32
    %c0_i32_0 = arith.constant 0 : i32
    %c0_i32_1 = arith.constant 0 : i32
    return %arg0, %c0_i32, %c0_i32_0 : i32, i32, i32
  }
  func.func @transform_2(%arg0: i32) -> (i32, i32, i32) {
    %c0_i32 = arith.constant 0 : i32
    %c0_i32_0 = arith.constant 0 : i32
    %c0_i32_1 = arith.constant 0 : i32
    %c0_i32_2 = arith.constant 0 : i32
    return %c0_i32, %c0_i32_0, %c0_i32_1 : i32, i32, i32
  }
  func.func @transform_3(%arg0: i32) -> (i32, i32) {
    %c0_i32 = arith.constant 0 : i32
    %c0_i32_0 = arith.constant 0 : i32
    %c0_i32_1 = arith.constant 0 : i32
    return %c0_i32, %c0_i32_0 : i32, i32
  }
  func.func @transform_4(%arg0: i32) -> (i32, i32) {
    %c0_i32 = arith.constant 0 : i32
    %c0_i32_0 = arith.constant 0 : i32
    %c0_i32_1 = arith.constant 0 : i32
    return %c0_i32, %c0_i32_0 : i32, i32
  }
  func.func @transform_5(%arg0: i32) -> (i32, i32, i32) {
    %c0_i32 = arith.constant 0 : i32
    %c0_i32_0 = arith.constant 0 : i32
    %c0_i32_1 = arith.constant 0 : i32
    return %arg0, %c0_i32, %c0_i32_0 : i32, i32, i32
  }
}

</mosaic_0001>

<bundles_post_ra>
// kernel: tpu_custom_call.1
= control target key start
LH: loop header
LB: loop body
LE: loop exit
PB: predicated region body
PF: predicated region fallthrough
CT: control target
= control target key end

     0   :  { %10 = vsyncpa [#allocation3], 0  ;;  %s8858_s0 = inlined_call_operand.vmem [shape: f32[4,66,64], index: 0, kind: input, shape index: {}]   ;;  %s8859_s1 = inlined_call_operand.vmem [shape: f32[4,66,1], index: 1, kind: input, shape index: {}]   ;;  %s8860_s2 = inlined_call_operand.vmem [shape: f32[3,64,128], index: 2, kind: input, shape index: {}]   ;;  %s8861_s3 = inlined_call_operand.vmem [shape: f32[1,128], index: 3, kind: input, shape index: {}]   ;;  %s8862_s4 = inlined_call_operand.vmem [shape: f32[1,128], index: 4, kind: input, shape index: {}]   ;;  %s8863_s5 = inlined_call_operand.hbm [shape: f32[4,64,128], index: 5, kind: output, shape index: {}]  }
   0x1   :  { %12 = vsyncpa [#allocation3 + $0x1], 0  ;;  %s6726_s18 = smov 0   ;;  %s6728_s19 = smov 0  }
   0x2   :  { %s6730_s20 = smov 0   ;;  %s6732_s21 = smov 0  }
   0x3 LB: > { %s6747_s22 = sadd.s32 4294967295, %s6690_s21   ;;  %s4708_s23 = sadd.s32 4294967294, %s6690_s21   ;;  %s6690_s21 = sphi %s6732_s21, %s9448_s21   ;;  %s6686_s20 = sphi %s6730_s20, %s9447_s20   ;;  %s6682_s19 = sphi %s6728_s19, %s9446_s19   ;;  %s6678_s18 = sphi %s6726_s18, %s9445_s18  }
   0x4   : > { %s6751_s24 = sadd.s32 1, %s6690_s21   ;;  %s140_s25 = sadd.s32 1, %s6686_s20 }
   0x5   : > { %s137_s26 = ssub.s32 %s6690_s21, %s6751_s24  ;;  %p150_p0 = scmp.ne.s32.totalorder %s6686_s20, %s6682_s19 }
   0x6   : > { %p138_p1 = scmp.eq.s32.totalorder %s137_s26, 0  ;;  %p151_p2 = scmp.eq.s32.totalorder %s6747_s22, 1 }
   0x7   : > { %p156_p3 = scmp.ne.s32.totalorder %s6682_s19, %s6678_s18  ;;  %p157_p4 = scmp.eq.s32.totalorder %s4708_s23, 1 }
   0x8   : > { %s6762_s27 = scalar_select %p138_p1, %s6686_s20, %s140_s25  }
   0x9   : > { %p6764_p5 = por %p151_p2, %p150_p0  ;;  %p6768_p6 = por %p157_p4, %p156_p3 }
   0xa   : > { %p4711_p7 = scmp.ge.s32.totalorder %s6690_s21, 1  ;;  %p204_p8 = scmp.lt.s32.totalorder %s6690_s21, 3 }
   0xc   : > { %p205_p9 = pnand %p4711_p7, %p204_p8 }
   0xe   : > { %208 = sbr.rel (%p205_p9) target bundleno = 970 (0x3ca), region = 40 }
  0x15   : > { %s4713_s30 = sshll.u32 %s6747_s22, 1  ;;  %v6778_v0 = vld [vmem:[%s8860_s2] sm:$0xff]  ;;  %v6783_v1 = vld [vmem:[%s8860_s2 + $0x8] sm:$0xff]  ;;  %v6692_v2 = vmov 0   ;;  %v6801_v6 = vld [vmem:[%s8860_s2 + $0x10] sm:$0xff]  ;;  %vm468_vm0 = vcmask 523264  }
  0x16   : > { %6499 = vset.pattern.permute.xlu1 %v6692_v2  ;;  %6498 = vset.pattern.permute.xlu0 %v6692_v2  ;;  %p240_p10 = scmp.lt.s32.totalorder %s4713_s30, 3  ;;  %v1716_v3 = vand.u32 4294901760, %v6778_v0  ;;  %v1719_v4 = vand.u32 4294901760, %v6783_v1  ;;  %v6806_v7 = vld [vmem:[%s8860_s2 + $0x18] sm:$0xff]  ;;  %v1722_v8 = vand.u32 4294901760, %v6801_v6  ;;  %v6834_v17 = vld [vmem:[%s8860_s2 + $0x40] sm:$0xff] }
  0x17   : > { %v1725_v9 = vand.u32 4294901760, %v6806_v7  ;;  %v6839_v18 = vld [vmem:[%s8860_s2 + $0x48] sm:$0xff]  ;;  %v502_v19 = vand.u32 4294901760, %v6834_v17  ;;  %v6846_v21 = vld [vmem:[%s8860_s2 + $0x20] sm:$0xff]  ;;  %v6858_v25 = vld [vmem:[%s8860_s2 + $0x50] sm:$0xff]  ;;  %vm424_vm1 = vcmask 1046528  }
  0x18   : > { %s9450_s30 = smov (!%p240_p10, %s4713_s30), 3  ;;  %v6793_v5 = vpack.c.bf16 %v1719_v4, %v1716_v3  ;;  %v505_v20 = vand.u32 4294901760, %v6839_v18  ;;  %v6851_v22 = vld [vmem:[%s8860_s2 + $0x28] sm:$0xff]  ;;  %v1728_v23 = vand.u32 4294901760, %v6846_v21  ;;  %v6863_v26 = vld [vmem:[%s8860_s2 + $0x58] sm:$0xff]  ;;  %v6868_v27 = vld [vmem:[%s8860_s2 + $0x30] sm:$0xff]  ;;  %v6956_v61 = vsub.f32 %v6778_v0, %v1716_v3 }
  0x19   : > { %s6455_s10 = smul.u32 72, %s9450_s30  ;;  %v6823_v12 = vpack.c.bf16 %v1725_v9, %v1722_v8  ;;  %v1731_v24 = vand.u32 4294901760, %v6851_v22  ;;  %v508_v31 = vand.u32 4294901760, %v6858_v25  ;;  %v511_v32 = vand.u32 4294901760, %v6863_v26  ;;  %v6883_v33 = vld [vmem:[%s8860_s2 + $0x38] sm:$0xff]  ;;  %v4721_v41 = vld [vmem:[%s8860_s2 + $0x60] sm:$0xff] }
  0x1a   : > { %9080 = vst [vmem:[#allocation5_spill] sm:$0xff] %v6793_v5  ;;  %6040 = vmatprep.subr.bf16.mxu0 %v6793_v5  ;;  %v6876_v30 = vpack.c.bf16 %v505_v20, %v502_v19  ;;  %v1734_v34 = vand.u32 4294901760, %v6868_v27  ;;  %v1737_v36 = vand.u32 4294901760, %v6883_v33  ;;  %v4722_v42 = vld [vmem:[%s8860_s2 + $0x68] sm:$0xff]  ;;  %v514_v45 = vand.u32 4294901760, %v4721_v41  ;;  %v4723_v52 = vld [vmem:[%s8860_s2 + $0x70] sm:$0xff] }
  0x1b   : > { %6042 = vmatpush3.bf16.msra.mxu0 %v6793_v5  ;;  %s6813_s17 = scalar_lea.vmem %s8859_s1, %s6455_s10  ;;  %9081 = vst [vmem:[#allocation6_spill] sm:$0xff] %v6823_v12  ;;  %v6890_v35 = vpack.c.bf16 %v1731_v24, %v1728_v23  ;;  %v6898_v37 = vpack.c.bf16 %v511_v32, %v508_v31  ;;  %v517_v46 = vand.u32 4294901760, %v4722_v42  ;;  %v4724_v53 = vld [vmem:[%s8860_s2 + $0x78] sm:$0xff]  ;;  %v520_v54 = vand.u32 4294901760, %v4723_v52  ;;  %9090 = vst [vmem:[#allocation15_spill] sm:$0xff] %v6956_v61  ;;  %s7082_s16 = scalar_lea.vmem %s8858_s0, %s6455_s10 }
  0x1c   : > { %v256_v10 = vld [vmem:[%s6813_s17 + $0x10] sm:$0xff]  ;;  %v254_v11 = vld [vmem:[%s6813_s17] sm:$0xff]  ;;  %v257_v13 = vld [vmem:[%s6813_s17 + $0x18] sm:$0xff]  ;;  %6044 = vmatprep.subr.bf16.mxu0 %v6823_v12  ;;  %9082 = vst [vmem:[#allocation7_spill] sm:$0xff] %v6876_v30  ;;  %5896 = vmatprep.subr.bf16.mxu1 %v6876_v30  ;;  %v6904_v38 = vpack.c.bf16 %v1737_v36, %v1734_v34  ;;  %v523_v55 = vand.u32 4294901760, %v4724_v53  ;;  %v6946_v59 = vsub.f32 %v6834_v17, %v502_v19  ;;  %vm2897_vm2 = vcmask 1045504  }
  0x1d   : > { %302 = vperm.xlu1 %6499, %v256_v10   ;;  %292 = vperm.xlu0 %6498, %v254_v11   ;;  %v255_v14 = vld [vmem:[%s6813_s17 + $0x8] sm:$0xff]  ;;  %v258_v16 = vld [vmem:[%s6813_s17 + $0x20] sm:$0xff]  ;;  %v261_v28 = vld [vmem:[%s6813_s17 + $0x38] sm:$0xff]  ;;  %9083 = vst [vmem:[#allocation8_spill] sm:$0xff] %v6890_v35  ;;  %v6923_v47 = vpack.c.bf16 %v517_v46, %v514_v45  ;;  %v6951_v60 = vsub.f32 %v6839_v18, %v505_v20  ;;  %v8867_v10 = vand.u32 4294901760, %v6956_v61  ;;  %s236_s26 = sand.u32 1, %s6682_s19  }
  0x1e   : > { %v259_v15 = vld [vmem:[%s6813_s17 + $0x28] sm:$0xff]  ;;  %v260_v29 = vld [vmem:[%s6813_s17 + $0x30] sm:$0xff]  ;;  %9084 = vst [vmem:[#allocation9_spill] sm:$0xff] %v6898_v37  ;;  %9085 = vst [vmem:[#allocation10_spill] sm:$0xff] %v6904_v38  ;;  %5898 = vmatpush3.bf16.msra.mxu1 %v6876_v30  ;;  %v6939_v58 = vpack.c.bf16 %v523_v55, %v520_v54  ;;  %v6961_v62 = vsub.f32 %v6783_v1, %v1719_v4  ;;  %v8875_v63 = vand.u32 4294901760, %v6946_v59  ;;  %s4712_s6 = sshll.u32 %s236_s26, 7 }
  0x1f   : > { %6046 = vmatpush3.bf16.msra.mxu0 %v6823_v12  ;;  %v263_v39 = vld [vmem:[%s6813_s17 + $0x48] sm:$0xff]  ;;  %v262_v40 = vld [vmem:[%s6813_s17 + $0x40] sm:$0x3]  ;;  %5900 = vmatprep.subr.bf16.mxu1 %v6898_v37  ;;  %v265_v43 = vld [vmem:[%s6813_s17 + $0x58] sm:$0xff]  ;;  %9086 = vst [vmem:[#allocation11_spill] sm:$0xff] %v6923_v47  ;;  %v8874_v2 = vand.u32 4294901760, %v6951_v60  ;;  %v6996_v17 = vsub.f32 %v6801_v6, %v1722_v8  ;;  %v7001_v18 = vsub.f32 %v6806_v7, %v1725_v9 }
  0x20   : > { %6048 = vmatprep.subr.bf16.mxu0 %v6890_v35  ;;  %v264_v44 = vld [vmem:[%s6813_s17 + $0x50] sm:$0xff]  ;;  %v267_v48 = vld [vmem:[%s6813_s17 + $0x68] sm:$0xff]  ;;  %v266_v49 = vld [vmem:[%s6813_s17 + $0x60] sm:$0xff]  ;;  %9087 = vst [vmem:[#allocation12_spill] sm:$0xff] %v6939_v58  ;;  %v8866_v11 = vand.u32 4294901760, %v6961_v62  ;;  %v7016_v7 = vsub.f32 %v6846_v21, %v1728_v23  ;;  %v7021_v9 = vsub.f32 %v6851_v22, %v1731_v24  ;;  %s8745_s7 = scalar_lea.vmem [#allocation2], %s4712_s6 }
  0x21   : > { %307 = vperm.xlu1 %6499, %v257_v13   ;;  %297 = vperm.xlu0 %6498, %v255_v14   ;;  %v269_v50 = vld [vmem:[%s6813_s17 + $0x78] sm:$0xff]  ;;  %v268_v51 = vld [vmem:[%s6813_s17 + $0x70] sm:$0xff]  ;;  %v271_v56 = vld [vmem:[%s6813_s17 + $0x88] sm:$0x3]  ;;  %9088 = vst [vmem:[#allocation13_spill] sm:$0xff] %v6946_v59  ;;  %v738_v13 = vsub.f32 %v6946_v59, %v8875_v63  ;;  %v745_v0 = vsub.f32 %v6951_v60, %v8874_v2  ;;  %s4742_s8 = sshll.u32 %s6747_s22, 11 }
  0x22   : > { %5902 = vmatpush3.bf16.msra.mxu1 %v6898_v37  ;;  %v270_v57 = vld [vmem:[%s6813_s17 + $0x80] sm:$0xff]  ;;  %9089 = vst [vmem:[#allocation14_spill] sm:$0xff] %v6951_v60  ;;  %9091 = vst [vmem:[#allocation16_spill] sm:$0xff] %v6961_v62  ;;  %v6977_v1 = vpack.c.bf16 %v8866_v11, %v8867_v10  ;;  %v277_v10 = vld [vmem:[%s7082_s16 + $0x28] sm:$0xff]  ;;  %s4634_s9 = sshll.u32 %s8745_s7, 4  ;;  %s8810_s13 = scalar_lea.hbm %s8863_s5, %s4742_s8  ;;  %s8812_s9 = int_to_ptr.vmem [resolvable:$true] %s4634_s9 }
  0x23   : > { %6050 = vmatpush3.bf16.msra.mxu0 %v6890_v35  ;;  %5904 = vmatprep.subr.bf16.mxu1 %v6923_v47  ;;  %v739_v3 = vand.u32 4294901760, %v738_v13  ;;  %v746_v4 = vand.u32 4294901760, %v745_v0  ;;  %9094 = vst [vmem:[#allocation19_spill] sm:$0xff] %v6996_v17  ;;  %9095 = vst [vmem:[#allocation20_spill] sm:$0xff] %v7001_v18  ;;  %v8864_v13 = vand.u32 4294901760, %v7001_v18  ;;  %v276_v2 = vld [vmem:[%s7082_s16 + $0x20] sm:$0xff] }
  0x24   : > { %6052 = vmatprep.subr.bf16.mxu0 %v6904_v38  ;;  %9096 = vst [vmem:[#allocation21_spill] sm:$0xff] %v7016_v7  ;;  %9097 = vst [vmem:[#allocation22_spill] sm:$0xff] %v7021_v9  ;;  %s8817_s22 = scalar_lea.sflag [#allocation3], %s236_s26  ;;  %s6628_s14 = scalar_lea.vmem %s8812_s9, 2048 }
  0x25   : > { %317 = vperm.xlu1 %6499, %v259_v15   ;;  %312 = vperm.xlu0 %6498, %v258_v16   ;;  %v6980_v14 = vpack.c.bf16 %v746_v4, %v739_v3  ;;  %v6986_v15 = vsub.f32 %v6858_v25, %v508_v31  ;;  %v6991_v16 = vsub.f32 %v6863_v26, %v511_v32  ;;  %v275_v3 = vld [vmem:[%s7082_s16 + $0x18] sm:$0xff]  ;;  %v273_v4 = vld [vmem:[%s7082_s16 + $0x8] sm:$0xff]  ;;  %p6629_p11 = scmp.ne.s32.totalorder %s8812_s9, %s6628_s14  ;;  %s6693_s17 = smov [#allocation2]  }
  0x26   : > { %5906 = vmatpush3.bf16.msra.mxu1 %v6923_v47  ;;  %v7025_v31 = vsub.f32 %v4722_v42, %v517_v46  ;;  %v7030_v32 = vsub.f32 %v6868_v27, %v1734_v34  ;;  %v7047_v27 = vsub.f32 %v4724_v53, %v523_v55  ;;  %v272_v53 = vld [vmem:[%s7082_s16] sm:$0xff]  ;;  %v274_v55 = vld [vmem:[%s7082_s16 + $0x10] sm:$0xff]  ;;  %s6632_s15 = sshll.u32 %s6693_s17, 4  ;;  %s6633_s15 = int_to_ptr.vmem [resolvable:$false] %s6632_s15 }
  0x27   : > { %6054 = vmatpush3.bf16.msra.mxu0 %v6904_v38  ;;  %5908 = vmatprep.subr.bf16.mxu1 %v6939_v58  ;;  %9092 = vst [vmem:[#allocation17_spill] sm:$0xff] %v6986_v15  ;;  %9093 = vst [vmem:[#allocation18_spill] sm:$0xff] %v6991_v16  ;;  %v8873_v19 = vand.u32 4294901760, %v6986_v15  ;;  %v8872_v20 = vand.u32 4294901760, %v6991_v16  ;;  %p6630_p12 = pnand %p6629_p11, %p6764_p5  ;;  %p6635_p0 = scmp.lt.s32.totalorder %s8812_s9, %s6633_s15 }
  0x28   : > { %6056 = vmatprep.subr.bf16.mxu0 %v6977_v1  ;;  %9099 = vst [vmem:[#allocation24_spill] sm:$0xff] %v7025_v31  ;;  %9100 = vst [vmem:[#allocation25_spill] sm:$0xff] %v7030_v32  ;;  %v8870_v23 = vand.u32 4294901760, %v7025_v31 }
  0x29   : > { %327 = vperm.xlu1 %6499, %v261_v28   ;;  %322 = vperm.xlu0 %6498, %v260_v29   ;;  %v752_v25 = vsub.f32 %v6986_v15, %v8873_v19  ;;  %v759_v26 = vsub.f32 %v6991_v16, %v8872_v20  ;;  %v7023_v29 = vsub.f32 %v4721_v41, %v514_v45  ;;  %v8868_v41 = vand.u32 4294901760, %v7047_v27  ;;  %p6631_p13 = pneg %p6630_p12 }
  0x2a   : > { %5910 = vmatpush3.bf16.msra.mxu1 %v6939_v58  ;;  %v773_v24 = vsub.f32 %v7025_v31, %v8870_v23  ;;  %9103 = vst [vmem:[#allocation28_spill] sm:$0xff] %v7047_v27 }
  0x2b   : > { %5912 = vmatprep.subr.bf16.mxu1 %v6980_v14  ;;  %v753_v28 = vand.u32 4294901760, %v752_v25  ;;  %v760_v6 = vand.u32 4294901760, %v759_v26  ;;  %9098 = vst [vmem:[#allocation23_spill] sm:$0xff] %v7023_v29  ;;  %v8871_v21 = vand.u32 4294901760, %v7023_v29 }
  0x2d   : > { %337 = vperm.xlu1 %6499, %v263_v39   ;;  %332 = vperm.xlu0 %6498, %v262_v40   ;;  %v7011_v8 = vpack.c.bf16 %v760_v6, %v753_v28  ;;  %v7035_v39 = vsub.f32 %v6883_v33, %v1737_v36  ;;  %v766_v22 = vsub.f32 %v7023_v29, %v8871_v21  ;;  %v774_v33 = vand.u32 4294901760, %v773_v24 }
  0x2e   : > { %v7045_v40 = vsub.f32 %v4723_v52, %v520_v54  ;;  %v8876_v24 = vand.u32 4294901760, %v7021_v9 }
  0x2f   : > { %9101 = vst [vmem:[#allocation26_spill] sm:$0xff] %v7035_v39  ;;  %v767_v34 = vand.u32 4294901760, %v766_v22  ;;  %v8877_v22 = vand.u32 4294901760, %v7016_v7 }
  0x30   : > { %9102 = vst [vmem:[#allocation27_spill] sm:$0xff] %v7045_v40  ;;  %v8869_v36 = vand.u32 4294901760, %v7045_v40  ;;  %v7075_v52 = vpack.c.bf16 %v7047_v27, %v7045_v40 }
  0x31   : > { %347 = vperm.xlu1 %6499, %v265_v43   ;;  %342 = vperm.xlu0 %6498, %v264_v44   ;;  %v7051_v42 = vpack.c.bf16 %v774_v33, %v767_v34  ;;  %v787_v44 = vsub.f32 %v7047_v27, %v8868_v41 }
  0x32   : > { %v780_v43 = vsub.f32 %v7045_v40, %v8869_v36  ;;  %9104 = vst [vmem:[#allocation29_spill] sm:$0xff] %v7075_v52  ;;  %v7128_v36 = vpack.c.bf16 %v8876_v24, %v8877_v22 }
  0x33   : > { %v788_v46 = vand.u32 4294901760, %v787_v44 }
  0x34   : > { %v781_v45 = vand.u32 4294901760, %v780_v43 }
  0x35   : > { %357 = vperm.xlu1 %6499, %v267_v48   ;;  %352 = vperm.xlu0 %6498, %v266_v49   ;;  %v7063_v49 = vpack.c.bf16 %v6951_v60, %v6946_v59 }
  0x36   : > { %v7059_v48 = vpack.c.bf16 %v788_v46, %v781_v45 }
  0x39   : > { %367 = vperm.xlu1 %6499, %v269_v50   ;;  %362 = vperm.xlu0 %6498, %v268_v51   ;;  %v7067_v50 = vpack.c.bf16 %v6991_v16, %v6986_v15  ;;  %v7071_v51 = vpack.c.bf16 %v7025_v31, %v7023_v29 }
  0x3d   : > { %377 = vperm.xlu1 %6499, %v271_v56   ;;  %372 = vperm.xlu0 %6498, %v270_v57   ;;  %v8865_v57 = vand.u32 4294901760, %v6996_v17 }
  0x3f   : > { %v7098_v6 = vpack.c.bf16 %v8864_v13, %v8865_v57 }
  0x9c   : > { %v303_v54 = vpop.permute.xlu1 %302  ;;  %v293_v56 = vpop.permute.xlu0 %292 }
  0x9d   : > { %v7088_v0 = vmul.f32 %v293_v56, %v272_v53  ;;  %v7092_v25 = vmul.f32 %v303_v54, %v274_v55  ;;  %v4540_v33 = vrot.slane %v303_v54, 1  ;;  %v4537_v53 = vrot.slane %v293_v56, 1 }
  0x9f   : > { %v1683_v46 = vsel %vm468_vm0, %v7088_v0, 0  ;;  %v1687_v57 = vsel %vm468_vm0, %v7092_v25, 0  ;;  %v2901_v11 = vrot.slane %v7092_v25, 2 }
  0xa0   : > { %v308_v26 = vpop.permute.xlu1 %307  ;;  %v298_v28 = vpop.permute.xlu0 %297  ;;  %v7130_v23 = vand.u32 4294901760, %v1683_v46  ;;  %v7141_v63 = vand.u32 4294901760, %v1687_v57 }
  0xa1   : > { %v7103_v43 = vmul.f32 %v308_v26, %v275_v3  ;;  %v4542_v44 = vrot.slane %v308_v26, 1  ;;  %v7105_v45 = vmul.f32 %v298_v28, %v273_v4  ;;  %v4538_v55 = vrot.slane %v298_v28, 1 }
  0xa2   : > { %v2898_v4 = vrot.slane %v7088_v0, 2  ;;  %9106 = vst [vmem:[#allocation31_spill] sm:$0xff] %v7130_v23  ;;  %9109 = vst [vmem:[#allocation34_spill] sm:$0xff] %v7141_v63 }
  0xa3   : > { %v2903_v54 = vrot.slane %v7103_v43, 2  ;;  %v7115_v3 = vsel %vm424_vm1, %v4540_v33, %v4542_v44  ;;  %v1685_v26 = vsel %vm468_vm0, %v7105_v45, 0  ;;  %v2899_v56 = vrot.slane %v7105_v45, 2 }
  0xa4   : > { %9105 = vst [vmem:[#allocation30_spill] sm:$0xff] %v7115_v3  ;;  %v7121_v28 = vpop.permute.xlu1 %317  ;;  %v313_v41 = vpop.permute.xlu0 %312  ;;  %v1689_v21 = vsel %vm468_vm0, %v7103_v43, 0  ;;  %v7138_v19 = vsel %vm424_vm1, %v4537_v53, %v4538_v55  ;;  %v7143_v13 = vand.u32 4294901760, %v1685_v26  ;;  %v430_v22 = vrot.slane %v7103_v43, 1 }
  0xa5   : > { %v7135_v20 = vsel %vm2897_vm2, %v2901_v11, %v2903_v54  ;;  %9108 = vst [vmem:[#allocation33_spill] sm:$0xff] %v7138_v19  ;;  %v7146_v34 = vsel %vm2897_vm2, %v2898_v4, %v2899_v56  ;;  %v7149_v24 = vsel %vm2897_vm2, %v2899_v56, %v2901_v11  ;;  %v7153_v3 = vsel %vm424_vm1, %v4538_v55, %v4540_v33 }
  0xa6   : > { %9107 = vst [vmem:[#allocation32_spill] sm:$0xff] %v7135_v20  ;;  %9110 = vst [vmem:[#allocation35_spill] sm:$0xff] %v7143_v13  ;;  %v7156_v9 = vmul.f32 %v7121_v28, %v277_v10  ;;  %v9114_v53 = vand.u32 4294901760, %v7030_v32  ;;  %v9115_v19 = vand.u32 4294901760, %v7035_v39  ;;  %v7164_v4 = vand.u32 4294901760, %v1689_v21  ;;  %v279_v39 = vld [vmem:[%s7082_s16 + $0x38] sm:$0xff] }
  0xa7   : > { %9111 = vst [vmem:[#allocation36_spill] sm:$0xff] %v7146_v34  ;;  %9112 = vst [vmem:[#allocation37_spill] sm:$0xff] %v7149_v24  ;;  %v4546_v11 = vrot.slane %v7121_v28, 1  ;;  %v384_v56 = vmul.f32 %v313_v41, %v276_v2  ;;  %v4544_v18 = vrot.slane %v313_v41, 1  ;;  %v428_v33 = vrot.slane %v7092_v25, 1 }
  0xa8   : > { %9113 = vst [vmem:[#allocation38_spill] sm:$0xff] %v7153_v3  ;;  %v7162_v7 = vpack.c.bf16 %v9115_v19, %v9114_v53  ;;  %9116 = vst [vmem:[#allocation39_spill] sm:$0xff] %v7164_v4  ;;  %v7167_v43 = vpop.permute.xlu1 %327  ;;  %v2907_v55 = vrot.slane %v7156_v9, 2  ;;  %v7173_v3 = vsub.f32 %v1683_v46, %v7130_v23  ;;  %v323_v19 = vpop.permute.xlu0 %322  ;;  %v7176_v53 = vsub.f32 %v1687_v57, %v7141_v63  ;;  %v278_v57 = vld [vmem:[%s7082_s16 + $0x30] sm:$0xff] }
  0xa9   : > { %v7180_v2 = vsub.f32 %v1685_v26, %v7143_v13  ;;  %v1691_v41 = vsel %vm468_vm0, %v384_v56, 0  ;;  %v1693_v25 = vsel %vm468_vm0, %v7156_v9, 0  ;;  %v2905_v10 = vrot.slane %v384_v56, 2 }
  0xaa   : > { %9117 = vst [vmem:[#allocation40_spill] sm:$0xff] %v7173_v3  ;;  %9118 = vst [vmem:[#allocation41_spill] sm:$0xff] %v7176_v53  ;;  %v7187_v32 = vsel %vm424_vm1, %v4542_v44, %v4544_v18  ;;  %v7190_v46 = vsel %vm424_vm1, %v4544_v18, %v4546_v11  ;;  %v7194_v17 = vsel %vm424_vm1, %v428_v33, %v430_v22  ;;  %v434_v28 = vrot.slane %v7156_v9, 1 }
  0xab   : > { %9119 = vst [vmem:[#allocation42_spill] sm:$0xff] %v7180_v2  ;;  %9120 = vst [vmem:[#allocation43_spill] sm:$0xff] %v7187_v32  ;;  %v7197_v26 = vsub.f32 %v1689_v21, %v7164_v4  ;;  %v8901_v62 = vand.u32 4294901760, %v7173_v3  ;;  %v7203_v27 = vand.u32 4294901760, %v1691_v41  ;;  %v7206_v44 = vsel %vm2897_vm2, %v2903_v54, %v2905_v10 }
  0xac   : > { %9121 = vst [vmem:[#allocation44_spill] sm:$0xff] %v7190_v46  ;;  %v7201_v61 = vpop.permute.xlu1 %337  ;;  %9124 = vst [vmem:[#allocation47_spill] sm:$0xff] %v7206_v44  ;;  %v7209_v18 = vsel %vm2897_vm2, %v2905_v10, %v2907_v55  ;;  %v7212_v46 = vmul.f32 %v7167_v43, %v279_v39  ;;  %v7214_v32 = vand.u32 4294901760, %v1693_v25  ;;  %v4550_v9 = vrot.slane %v7167_v43, 1  ;;  %v333_v29 = vpop.permute.xlu0 %332 }
  0xad   : > { %9122 = vst [vmem:[#allocation45_spill] sm:$0xff] %v7197_v26  ;;  %9123 = vst [vmem:[#allocation46_spill] sm:$0xff] %v7203_v27  ;;  %5551 = vmatprep.mubr.f32.mxu0 %v8901_v62  ;;  %v386_v21 = vmul.f32 %v323_v19, %v278_v57  ;;  %v4548_v40 = vrot.slane %v323_v19, 1  ;;  %v432_v31 = vrot.slane %v384_v56, 1  ;;  %v9127_v16 = vrot.slane %v7105_v45, 1 }
  0xae   : > { %9125 = vst [vmem:[#allocation48_spill] sm:$0xff] %v7209_v18  ;;  %9126 = vst [vmem:[#allocation49_spill] sm:$0xff] %v7214_v32  ;;  %v1697_v54 = vsel %vm468_vm0, %v7212_v46, 0  ;;  %v2911_v10 = vrot.slane %v7212_v46, 2  ;;  %v7232_v56 = vsub.f32 %v1691_v41, %v7203_v27  ;;  %v9132_v58 = vand.u32 4294901760, %v7180_v2 }
  0xaf   : > { %v7226_v3 = vsel %vm424_vm1, %v9127_v16, %v428_v33  ;;  %v7228_v43 = vand.u32 4294901760, %v1697_v54  ;;  %v1695_v19 = vsel %vm468_vm0, %v386_v21, 0  ;;  %v2909_v57 = vrot.slane %v386_v21, 2  ;;  %v281_v16 = vld [vmem:[%s7082_s16 + $0x48] sm:$0xff]  ;;  %v280_v33 = vld [vmem:[%s7082_s16 + $0x40] sm:$0x3] }
  0xb0   : > { %9129 = vst [vmem:[#allocation51_spill] sm:$0xff] %v7232_v56  ;;  %v436_v62 = vrot.slane %v386_v21, 1  ;;  %v7235_v15 = vsel %vm424_vm1, %v4546_v11, %v4548_v40  ;;  %v7238_v39 = vsel %vm424_vm1, %v4548_v40, %v4550_v9  ;;  %5552 = vmatmul.mubr.f32.vlgmr.msra.gmra.mrb[0].mxu0 %v9132_v58  ;;  %v7245_v60 = vsub.f32 %v1693_v25, %v7214_v32  ;;  %v7253_v11 = vpop.permute.xlu1 %347  ;;  %v283_v21 = vld [vmem:[%s7082_s16 + $0x58] sm:$0xff]  ;;  %v343_v37 = vpop.permute.xlu0 %342 }
  0xb1   : > { %9128 = vst [vmem:[#allocation50_spill] sm:$0xff] %v7228_v43  ;;  %9130 = vst [vmem:[#allocation52_spill] sm:$0xff] %v7235_v15  ;;  %v438_v59 = vrot.slane %v7212_v46, 1  ;;  %v7248_v47 = vand.u32 4294901760, %v1695_v19  ;;  %v7251_v41 = vsel %vm2897_vm2, %v2907_v55, %v2909_v57  ;;  %6058 = vmatpush3.bf16.msra.mxu0 %v6977_v1  ;;  %v7258_v58 = vsel %vm424_vm1, %v430_v22, %v432_v31 }
  0xb2   : > { %9131 = vst [vmem:[#allocation53_spill] sm:$0xff] %v7238_v39  ;;  %9133 = vst [vmem:[#allocation54_spill] sm:$0xff] %v7245_v60  ;;  %v7261_v40 = vsel %vm424_vm1, %v432_v31, %v434_v28  ;;  %v7264_v25 = vsel %vm2897_vm2, %v2909_v57, %v2911_v10  ;;  %v8913_v46 = vand.u32 4294901760, %v7176_v53  ;;  %6060 = vmatprep.subr.bf16.mxu0 %v7098_v6  ;;  %v4552_v15 = vrot.slane %v333_v29, 1 }
  0xb3   : > { %9134 = vst [vmem:[#allocation55_spill] sm:$0xff] %v7248_v47  ;;  %9135 = vst [vmem:[#allocation56_spill] sm:$0xff] %v7251_v41  ;;  %v7269_v55 = vsub.f32 %v1697_v54, %v7228_v43  ;;  %v389_v39 = vmul.f32 %v7201_v61, %v281_v16  ;;  %v388_v1 = vmul.f32 %v333_v29, %v280_v33  ;;  %v8916_v31 = vand.u32 4294901760, %v7197_v26  ;;  %v282_v54 = vld [vmem:[%s7082_s16 + $0x50] sm:$0xff] }
  0xb4   : > { %9136 = vst [vmem:[#allocation57_spill] sm:$0xff] %v7264_v25  ;;  %v7273_v22 = vsel %vm424_vm1, %v434_v28, %v436_v62  ;;  %5554 = vmatprep.mubr.f32.mxu0 %v8913_v46  ;;  %v7280_v2 = vmul.f32 %v7253_v11, %v283_v21  ;;  %v7284_v25 = vsel %vm424_vm1, %v436_v62, %v438_v59  ;;  %v4554_v46 = vrot.slane %v7201_v61, 1 }
  0xb5   : > { %9137 = vst [vmem:[#allocation58_spill] sm:$0xff] %v7269_v55  ;;  %v7287_v29 = vsub.f32 %v1695_v19, %v7248_v47  ;;  %v1699_v28 = vsel %vm468_vm0, %v389_v39, 0  ;;  %v440_v16 = vrot.slane %v388_v1, 1  ;;  %6062 = vmatpush3.bf16.msra.mxu0 %v7098_v6  ;;  %v2913_v57 = vrot.slane %v388_v1, 2 }
  0xb6   : > { %v7291_v33 = vand.u32 4294901760, %v1699_v28  ;;  %v7295_v21 = vsel %vm424_vm1, %v4550_v9, %v4552_v15  ;;  %5555 = vmatmul.mubr.f32.gmra.mrb[2].mxu0 %v8916_v31  ;;  %6064 = vmatprep.subr.bf16.mxu0 %v7128_v36  ;;  %v9141_v19 = vand.u32 4294901760, %v7232_v56  ;;  %v1703_v6 = vsel %vm468_vm0, %v7280_v2, 0 }
  0xb7   : > { %9138 = vst [vmem:[#allocation59_spill] sm:$0xff] %v7287_v29  ;;  %9140 = vst [vmem:[#allocation61_spill] sm:$0xff] %v7295_v21  ;;  %v441_v62 = vsel %vm424_vm1, %v438_v59, %v440_v16  ;;  %v390_v61 = vmul.f32 %v343_v37, %v282_v54  ;;  %v7310_v15 = vsel %vm2897_vm2, %v2911_v10, %v2913_v57  ;;  %v7312_v9 = vand.u32 4294901760, %v1703_v6 }
  0xb8   : > { %9139 = vst [vmem:[#allocation60_spill] sm:$0xff] %v7291_v33  ;;  %5557 = vmatprep.mubr.f32.mxu0 %v9141_v19  ;;  %v7307_v1 = vsel %vm468_vm0, %v441_v62, 0  ;;  %9142 = vst [vmem:[#allocation62_spill] sm:$0xff] %v7310_v15  ;;  %v442_v59 = vrot.slane %v389_v39, 1  ;;  %v2915_v16 = vrot.slane %v389_v39, 2  ;;  %v7318_v54 = vsub.f32 %v1699_v28, %v7291_v33 }
  0xb9   : > { %9143 = vst [vmem:[#allocation63_spill] sm:$0xff] %v7312_v9  ;;  %v443_v21 = vrot.slane %v390_v61, 1  ;;  %v1701_v19 = vsel %vm468_vm0, %v390_v61, 0  ;;  %6066 = vmatpush3.bf16.msra.mxu0 %v7128_v36  ;;  %v7321_v62 = vand.u32 4294901760, %v7307_v1  ;;  %v445_v10 = vrot.slane %v7280_v2, 1 }
  0xba   : > { %9144 = vst [vmem:[#allocation64_spill] sm:$0xff] %v7318_v54  ;;  %v2916_v57 = vrot.slane %v390_v61, 2  ;;  %6068 = vmatprep.subr.bf16.mxu0 %v7162_v7  ;;  %v7326_v39 = vsub.f32 %v1703_v6, %v7312_v9  ;;  %v7328_v53 = vand.u32 4294901760, %v1701_v19  ;;  %v4555_v31 = vrot.slane %v343_v37, 1  ;;  %v7347_v37 = vpop.permute.xlu1 %357 }
  0xbb   : > { %9145 = vst [vmem:[#allocation65_spill] sm:$0xff] %v7321_v62  ;;  %v9148_v36 = vrot.slane %v7105_v45, 1  ;;  %v9149_v28 = vrot.slane %v7088_v0, 1  ;;  %v7336_v26 = vsel %vm424_vm1, %v442_v59, %v443_v21  ;;  %v9151_v41 = vrot.slane %v7280_v2, 2  ;;  %v285_v45 = vld [vmem:[%s7082_s16 + $0x68] sm:$0xff] }
  0xbc   : > { %9146 = vst [vmem:[#allocation66_spill] sm:$0xff] %v7326_v39  ;;  %9147 = vst [vmem:[#allocation67_spill] sm:$0xff] %v7328_v53  ;;  %v7339_v61 = vsel %vm2897_vm2, %v2915_v16, %v2916_v57  ;;  %v7351_v0 = vsel %vm424_vm1, %v4554_v46, %v4555_v31  ;;  %v473_v46 = vsel %vm468_vm0, %v7194_v17, 0  ;;  %v8936_v30 = vand.u32 4294901760, %v7269_v55 }
  0xbd   : > { %v427_v56 = vsel %vm424_vm1, %v9149_v28, %v9148_v36  ;;  %9150 = vst [vmem:[#allocation68_spill] sm:$0xff] %v7339_v61  ;;  %v7344_v6 = vsel %vm2897_vm2, %v2916_v57, %v9151_v41  ;;  %9153 = vst [vmem:[#allocation70_spill] sm:$0xff] %v7351_v0  ;;  %v9154_v36 = vrot.slane %v7253_v11, 1  ;;  %v471_v28 = vsel %vm468_vm0, %v7226_v3, 0  ;;  %v353_v41 = vpop.permute.xlu0 %352  ;;  %v284_v57 = vld [vmem:[%s7082_s16 + $0x60] sm:$0xff]  ;;  %6070 = vmatpush3.bf16.msra.mxu0 %v7162_v7 }
  0xbe   : > { %9152 = vst [vmem:[#allocation69_spill] sm:$0xff] %v7344_v6  ;;  %v469_v15 = vsel %vm468_vm0, %v427_v56, 0  ;;  %v7364_v56 = vand.u32 4294901760, %v471_v28  ;;  %6072 = vmatprep.subr.bf16.mxu0 %v6793_v5  ;;  %v7380_v7 = vmul.f32 %v7347_v37, %v285_v45  ;;  %v7383_v6 = vsub.f32 %v1701_v19, %v7328_v53 }
  0xbf   : > { %v7356_v59 = vsel %vm424_vm1, %v4555_v31, %v9154_v36  ;;  %v7358_v16 = vand.u32 4294901760, %v469_v15  ;;  %v7372_v31 = vsel %vm424_vm1, %v443_v21, %v445_v10  ;;  %v7377_v36 = vand.u32 4294901760, %v473_v46 }
  0xc0   : > { %9155 = vst [vmem:[#allocation71_spill] sm:$0xff] %v7356_v59  ;;  %9157 = vst [vmem:[#allocation73_spill] sm:$0xff] %v7364_v56  ;;  %v7386_v17 = vsub.f32 %v471_v28, %v7364_v56  ;;  %v9162_v0 = vand.u32 4294901760, %v7245_v60  ;;  %v4561_v21 = vrot.slane %v7347_v37, 1  ;;  %v392_v59 = vmul.f32 %v353_v41, %v284_v57  ;;  %v287_v60 = vld [vmem:[%s7082_s16 + $0x78] sm:$0xff] }
  0xc1   : > { %9156 = vst [vmem:[#allocation72_spill] sm:$0xff] %v7358_v16  ;;  %v7375_v3 = vsub.f32 %v469_v15, %v7358_v16  ;;  %9159 = vst [vmem:[#allocation75_spill] sm:$0xff] %v7377_v36  ;;  %v7393_v61 = vsub.f32 %v473_v46, %v7377_v36  ;;  %v9164_v45 = vand.u32 4294901760, %v7287_v29  ;;  %v1707_v19 = vsel %vm468_vm0, %v7380_v7, 0 }
  0xc2   : > { %9160 = vst [vmem:[#allocation76_spill] sm:$0xff] %v7383_v6  ;;  %9161 = vst [vmem:[#allocation77_spill] sm:$0xff] %v7386_v17  ;;  %5558 = vmatmul.mubr.f32.gmra.mrb[4].mxu0 %v9162_v0  ;;  %v4559_v18 = vrot.slane %v353_v41, 1  ;;  %v8928_v28 = vand.u32 4294901760, %v7386_v17  ;;  %v7400_v44 = vand.u32 4294901760, %v1707_v19  ;;  %v447_v0 = vrot.slane %v392_v59, 1 }
  0xc3   : > { %9158 = vst [vmem:[#allocation74_spill] sm:$0xff] %v7375_v3  ;;  %v8925_v15 = vand.u32 4294901760, %v7375_v3  ;;  %9163 = vst [vmem:[#allocation78_spill] sm:$0xff] %v7393_v61  ;;  %5560 = vmatprep.mubr.f32.mxu0 %v9164_v45  ;;  %v8931_v46 = vand.u32 4294901760, %v7393_v61  ;;  %v2920_v29 = vrot.slane %v392_v59, 2  ;;  %v475_v45 = vsel %vm468_vm0, %v7258_v58, 0 }
  0xc4   : > { %9165 = vst [vmem:[#allocation79_spill] sm:$0xff] %v7400_v44  ;;  %v587_v41 = vsub.f32 %v7386_v17, %v8928_v28  ;;  %v7414_v37 = vsub.f32 %v1707_v19, %v7400_v44  ;;  %v1705_v20 = vsel %vm468_vm0, %v392_v59, 0  ;;  %v9167_v58 = vrot.slane %v7280_v2, 2  ;;  %v7428_v28 = vpop.permute.xlu1 %367  ;;  %v363_v2 = vpop.permute.xlu0 %362 }
  0xc5   : > { %v577_v57 = vsub.f32 %v7375_v3, %v8925_v15  ;;  %v597_v15 = vsub.f32 %v7393_v61, %v8931_v46  ;;  %v7421_v3 = vsel %vm424_vm1, %v445_v10, %v447_v0  ;;  %v9169_v17 = vrot.slane %v7380_v7, 2 }
  0xc6   : > { %9166 = vst [vmem:[#allocation80_spill] sm:$0xff] %v7414_v37  ;;  %v7426_v24 = vsel %vm2897_vm2, %v9167_v58, %v2920_v29  ;;  %v588_v19 = vand.u32 4294901760, %v587_v41  ;;  %v7442_v10 = vsel %vm424_vm1, %v4559_v18, %v4561_v21  ;;  %v286_v58 = vld [vmem:[%s7082_s16 + $0x70] sm:$0xff]  ;;  %v7445_v61 = vand.u32 4294901760, %v1705_v20  ;;  %5561 = vmatmul.mubr.f32.gmra.mrb[6].mxu0 %v8936_v30 }
  0xc7   : > { %v578_v34 = vand.u32 4294901760, %v577_v57  ;;  %9168 = vst [vmem:[#allocation81_spill] sm:$0xff] %v7426_v24  ;;  %v7434_v59 = vsel %vm2897_vm2, %v2920_v29, %v9169_v17  ;;  %v9171_v57 = vrot.slane %v7253_v11, 1  ;;  %9173 = vst [vmem:[#allocation84_spill] sm:$0xff] %v7442_v10  ;;  %v598_v24 = vand.u32 4294901760, %v597_v15 }
  0xc8   : > { %9170 = vst [vmem:[#allocation82_spill] sm:$0xff] %v7434_v59  ;;  %9174 = vst [vmem:[#allocation85_spill] sm:$0xff] %v7445_v61  ;;  %v7447_v41 = vand.u32 4294901760, %v475_v45  ;;  %v477_v11 = vsel %vm468_vm0, %v7261_v40, 0  ;;  %v7454_v17 = vmul.f32 %v7428_v28, %v287_v60  ;;  %v9178_v40 = vrot.slane %v7380_v7, 1 }
  0xc9   : > { %v7439_v46 = vsel %vm424_vm1, %v9171_v57, %v4559_v18  ;;  %5191 = vmatprep.mubr.f32.mxu1 %v578_v34  ;;  %v8937_v18 = vrot.slane %v7428_v28, 1  ;;  %v7461_v15 = vand.u32 4294901760, %v477_v11  ;;  %v7463_v57 = vmul.f32 %v363_v2, %v286_v58 }
  0xca   : > { %9172 = vst [vmem:[#allocation83_spill] sm:$0xff] %v7439_v46  ;;  %9175 = vst [vmem:[#allocation86_spill] sm:$0xff] %v7447_v41  ;;  %5192 = vmatmul.mubr.f32.vlgmr.msra.gmra.mrb[0].mxu1 %v588_v19  ;;  %v7459_v34 = vsub.f32 %v475_v45, %v7447_v41  ;;  %v4563_v19 = vrot.slane %v363_v2, 1  ;;  %v7468_v29 = vsel %vm424_vm1, %v447_v0, %v9178_v40  ;;  %v1711_v60 = vsel %vm468_vm0, %v7454_v17, 0 }
  0xcb   : > { %5914 = vmatpush3.bf16.msra.mxu1 %v6980_v14  ;;  %5194 = vmatprep.mubr.f32.mxu1 %v598_v24  ;;  %9177 = vst [vmem:[#allocation88_spill] sm:$0xff] %v7461_v15  ;;  %v479_v24 = vsel %vm468_vm0, %v7273_v22, 0  ;;  %v7480_v2 = vsub.f32 %v477_v11, %v7461_v15  ;;  %v9180_v0 = vand.u32 4294901760, %v7318_v54  ;;  %v7484_v58 = vand.u32 4294901760, %v1711_v60 }
  0xcc   : > { %9176 = vst [vmem:[#allocation87_spill] sm:$0xff] %v7459_v34  ;;  %5916 = vmatprep.subr.bf16.mxu1 %v7011_v8  ;;  %v451_v40 = vrot.slane %v7463_v57, 1  ;;  %v1709_v30 = vsel %vm468_vm0, %v7463_v57, 0  ;;  %v2924_v14 = vrot.slane %v7463_v57, 2  ;;  %v7491_v22 = vsel %vm424_vm1, %v4561_v21, %v4563_v19  ;;  %v7507_v21 = vpop.permute.xlu1 %377 }
  0xcd   : > { %9179 = vst [vmem:[#allocation89_spill] sm:$0xff] %v7480_v2  ;;  %5563 = vmatprep.mubr.f32.mxu0 %v9180_v0  ;;  %9181 = vst [vmem:[#allocation90_spill] sm:$0xff] %v7484_v58  ;;  %v7496_v11 = vsel %vm424_vm1, %v4563_v19, %v8937_v18  ;;  %v7499_v45 = vsub.f32 %v1705_v20, %v7445_v61  ;;  %v9185_v0 = vand.u32 4294901760, %v7459_v34  ;;  %v453_v57 = vrot.slane %v7454_v17, 1 }
  0xce   : > { %9182 = vst [vmem:[#allocation91_spill] sm:$0xff] %v7491_v22  ;;  %9183 = vst [vmem:[#allocation92_spill] sm:$0xff] %v7496_v11  ;;  %v289_v22 = vld [vmem:[%s7082_s16 + $0x88] sm:$0x3]  ;;  %v7511_v19 = vsub.f32 %v1711_v60, %v7484_v58  ;;  %v7513_v18 = vand.u32 4294901760, %v1709_v30  ;;  %v9189_v20 = vrot.slane %v7380_v7, 2 }
  0xcf   : > { %9184 = vst [vmem:[#allocation93_spill] sm:$0xff] %v7499_v45  ;;  %v607_v10 = vsub.f32 %v7459_v34, %v9185_v0  ;;  %5918 = vmatpush3.bf16.msra.mxu1 %v7011_v8  ;;  %9186 = vst [vmem:[#allocation94_spill] sm:$0xff] %v7507_v21  ;;  %v9191_v0 = vrot.slane %v7454_v17, 2  ;;  %v9193_v54 = vand.u32 4294901760, %v7480_v2  ;;  %v7529_v55 = vand.u32 4294901760, %v479_v24  ;;  %v7532_v34 = vpop.permute.xlu0 %372 }
  0xd0   : > { %9187 = vst [vmem:[#allocation95_spill] sm:$0xff] %v7511_v19  ;;  %9188 = vst [vmem:[#allocation96_spill] sm:$0xff] %v7513_v18  ;;  %v7518_v11 = vsel %vm2897_vm2, %v9189_v20, %v2924_v14  ;;  %5920 = vmatprep.subr.bf16.mxu1 %v7051_v42  ;;  %v288_v20 = vld [vmem:[%s7082_s16 + $0x80] sm:$0xff]  ;;  %s6634_s16 = scalar_lea.vmem %s6633_s15, 4096 }
  0xd1   : > { %9190 = vst [vmem:[#allocation97_spill] sm:$0xff] %v7518_v11  ;;  %v7523_v46 = vsel %vm2897_vm2, %v2924_v14, %v9191_v0  ;;  %v608_v8 = vand.u32 4294901760, %v607_v10  ;;  %v617_v60 = vsub.f32 %v7480_v2, %v9193_v54  ;;  %9194 = vst [vmem:[#allocation99_spill] sm:$0xff] %v7529_v55  ;;  %v9196_v11 = vrot.slane %v7380_v7, 1  ;;  %p6636_p1 = scmp.lt.s32.totalorder %s6634_s16, %s6628_s14 }
  0xd2   : > { %9192 = vst [vmem:[#allocation98_spill] sm:$0xff] %v7523_v46  ;;  %9195 = vst [vmem:[#allocation100_spill] sm:$0xff] %v7532_v34  ;;  %v481_v14 = vsel %vm468_vm0, %v7284_v25, 0  ;;  %v8947_v10 = vand.u32 4294901760, %v7326_v39  ;;  %v397_v0 = vmul.f32 %v7507_v21, %v289_v22  ;;  %v7545_v46 = vsub.f32 %v1709_v30, %v7513_v18 }
  0xd3   : > { %v7538_v52 = vsel %vm424_vm1, %v9196_v11, %v451_v40  ;;  %5195 = vmatmul.mubr.f32.gmra.mrb[2].mxu1 %v608_v8  ;;  %v618_v54 = vand.u32 4294901760, %v617_v60  ;;  %v7548_v59 = vsub.f32 %v479_v24, %v7529_v55  ;;  %v9198_v7 = vand.u32 4294901760, %v7383_v6  ;;  %p6637_p2 = por %p6636_p1, %p6635_p0 }
  0xd4   : > { %9197 = vst [vmem:[#allocation101_spill] sm:$0xff] %v7545_v46  ;;  %v7552_v11 = vand.u32 4294901760, %v481_v14  ;;  %v457_v25 = vrot.slane %v397_v0, 1  ;;  %v2930_v2 = vrot.slane %v397_v0, 2  ;;  %v396_v22 = vmul.f32 %v7532_v34, %v288_v20  ;;  %5922 = vmatpush3.bf16.msra.mxu1 %v7051_v42 }
  0xd5   : > { %5564 = vmatmul.mubr.f32.gmra.mrb[8].mxu0 %v9198_v7  ;;  %v8951_v8 = vrot.slane %v7532_v34, 1  ;;  %5197 = vmatprep.mubr.f32.mxu1 %v618_v54  ;;  %v8952_v30 = vand.u32 4294901760, %v7548_v59  ;;  %v7565_v60 = vsub.f32 %v7307_v1, %v7321_v62  ;;  %v9200_v42 = vrot.slane %v7428_v28, 1  ;;  %p6638_p3 = pnand %p6637_p2, %p6631_p13 }
  0xd6   : > { %9199 = vst [vmem:[#allocation102_spill] sm:$0xff] %v7552_v11  ;;  %5566 = vmatprep.mubr.f32.mxu0 %v8947_v10  ;;  %v7561_v24 = vsub.f32 %v481_v14, %v7552_v11  ;;  %5924 = vmatprep.subr.bf16.mxu1 %v7059_v48  ;;  %v455_v0 = vrot.slane %v396_v22, 1  ;;  %v1713_v20 = vsel %vm468_vm0, %v396_v22, 0  ;;  %v2928_v10 = vrot.slane %v396_v22, 2 }
  0xd7   : > { %v7575_v54 = vsel %vm424_vm1, %v9200_v42, %v8951_v8  ;;  %v454_v14 = vsel %vm424_vm1, %v451_v40, %v453_v57  ;;  %v627_v1 = vsub.f32 %v7548_v59, %v8952_v30  ;;  %v7582_v21 = vand.u32 4294901760, %v1713_v20 }
  0xd8   : > { %9201 = vst [vmem:[#allocation103_spill] sm:$0xff] %v7575_v54  ;;  %v8955_v7 = vand.u32 4294901760, %v7561_v24  ;;  %v9203_v39 = vand.u32 4294901760, %v7499_v45  ;;  %v456_v22 = vsel %vm424_vm1, %v453_v57, %v455_v0  ;;  %v458_v28 = vsel %vm424_vm1, %v455_v0, %v457_v25  ;;  %5926 = vmatpush3.bf16.msra.mxu1 %v7059_v48 }
  0xd9   : > { %9202 = vst [vmem:[#allocation104_spill] sm:$0xff] %v7582_v21  ;;  %v9204_v42 = vrot.slane %v7454_v17, 2  ;;  %v7594_v40 = vsel %vm2897_vm2, %v2928_v10, %v2930_v2  ;;  %v628_v30 = vand.u32 4294901760, %v627_v1  ;;  %v8954_v57 = vand.u32 4294901760, %v7565_v60  ;;  %5928 = vmatprep.subr.bf16.mxu1 %v7063_v49 }
  0xda   : > { %5567 = vmatmul.mubr.f32.gmra.mrb[10].mxu0 %v9203_v39  ;;  %v637_v34 = vsub.f32 %v7561_v24, %v8955_v7  ;;  %v7601_v39 = vsub.f32 %v1713_v20, %v7582_v21  ;;  %v8956_v17 = vand.u32 4294901760, %v7414_v37  ;;  %v485_v2 = vsel %vm468_vm0, %v7336_v26, 0 }
  0xdb   : > { %v7591_v8 = vsel %vm2897_vm2, %v9204_v42, %v2928_v10  ;;  %v487_v48 = vsel %vm468_vm0, %v7372_v31, 0  ;;  %v8957_v10 = vand.u32 4294901760, %v7545_v46  ;;  %5198 = vmatmul.mubr.f32.gmra.mrb[4].mxu1 %v628_v30  ;;  %v647_v0 = vsub.f32 %v7565_v60, %v8954_v57 }
  0xdc   : > { %9205 = vst [vmem:[#allocation105_spill] sm:$0xff] %v7601_v39  ;;  %v638_v25 = vand.u32 4294901760, %v637_v34  ;;  %v7614_v20 = vand.u32 4294901760, %v485_v2  ;;  %v7616_v1 = vand.u32 4294901760, %v487_v48  ;;  %5569 = vmatprep.mubr.f32.mxu0 %v8956_v17  ;;  %v8958_v26 = vand.u32 4294901760, %v7511_v19 }
  0xdd   : > { %v489_v31 = vsel %vm468_vm0, %v7421_v3, 0  ;;  %v491_v30 = vsel %vm468_vm0, %v7468_v29, 0  ;;  %v648_v42 = vand.u32 4294901760, %v647_v0  ;;  %v493_v29 = vsel %vm468_vm0, %v7538_v52, 0 }
  0xde   : > { %9206 = vst [vmem:[#allocation106_spill] sm:$0xff] %v7614_v20  ;;  %9207 = vst [vmem:[#allocation107_spill] sm:$0xff] %v7616_v1  ;;  %5200 = vmatprep.mubr.f32.mxu1 %v638_v25  ;;  %v7627_v57 = vsub.f32 %v485_v2, %v7614_v20  ;;  %v7630_v7 = vsub.f32 %v487_v48, %v7616_v1  ;;  %5570 = vmatmul.mubr.f32.gmra.mrb[12].mxu0 %v8957_v10  ;;  %v7634_v17 = vand.u32 4294901760, %v489_v31 }
  0xdf   : > { %5572 = vmatprep.mubr.f32.mxu0 %v8958_v26  ;;  %v7638_v3 = vand.u32 4294901760, %v491_v30  ;;  %v495_v25 = vsel %vm468_vm0, %v454_v14, 0  ;;  %v497_v2 = vsel %vm468_vm0, %v456_v22, 0  ;;  %5201 = vmatmul.mubr.f32.gmra.mrb[6].mxu1 %v648_v42  ;;  %v7649_v34 = vand.u32 4294901760, %v493_v29 }
  0xe0   : > { %9208 = vst [vmem:[#allocation108_spill] sm:$0xff] %v7634_v17  ;;  %v8963_v48 = vand.u32 4294901760, %v7627_v57  ;;  %v8966_v0 = vand.u32 4294901760, %v7630_v7  ;;  %v7647_v10 = vsub.f32 %v489_v31, %v7634_v17  ;;  %v7654_v54 = vand.u32 4294901760, %v495_v25 }
  0xe1   : > { %9209 = vst [vmem:[#allocation109_spill] sm:$0xff] %v7638_v3  ;;  %9210 = vst [vmem:[#allocation110_spill] sm:$0xff] %v7649_v34  ;;  %v7652_v26 = vsub.f32 %v491_v30, %v7638_v3  ;;  %v7656_v52 = vand.u32 4294901760, %v497_v2  ;;  %v499_v14 = vsel %vm468_vm0, %v458_v28, 0  ;;  %v9213_v19 = vand.u32 4294901760, %v7601_v39 }
  0xe2   : > { %9211 = vst [vmem:[#allocation111_spill] sm:$0xff] %v7654_v54  ;;  %v657_v22 = vsub.f32 %v7627_v57, %v8963_v48  ;;  %v667_v31 = vsub.f32 %v7630_v7, %v8966_v0  ;;  %v7669_v30 = vsub.f32 %v493_v29, %v7649_v34  ;;  %v7674_v28 = vsub.f32 %v495_v25, %v7654_v54 }
  0xe3   : > { %9212 = vst [vmem:[#allocation112_spill] sm:$0xff] %v7656_v52  ;;  %5573 = vmatmul.mubr.f32.gmra.mrb[14].mxu0 %v9213_v19  ;;  %v8973_v46 = vand.u32 4294901760, %v7652_v26  ;;  %v7677_v48 = vsub.f32 %v497_v2, %v7656_v52  ;;  %v7679_v37 = vand.u32 4294901760, %v499_v14  ;;  %v9215_v39 = vand.u32 4294901760, %v7647_v10 }
  0xe4   : > { %5591 = vmatprep.mubr.f32.mxu0 %v7130_v23  ;;  %v658_v0 = vand.u32 4294901760, %v657_v22  ;;  %v668_v42 = vand.u32 4294901760, %v667_v31  ;;  %v8975_v29 = vand.u32 4294901760, %v7669_v30  ;;  %v8974_v25 = vand.u32 4294901760, %v7674_v28 }
  0xe5   : > { %9214 = vst [vmem:[#allocation113_spill] sm:$0xff] %v7679_v37  ;;  %v677_v19 = vsub.f32 %v7647_v10, %v9215_v39  ;;  %v687_v45 = vsub.f32 %v7652_v26, %v8973_v46  ;;  %v7691_v2 = vsub.f32 %v499_v14, %v7679_v37 }
  0xe6   : > { %5203 = vmatprep.mubr.f32.mxu1 %v658_v0  ;;  %v697_v31 = vsub.f32 %v7669_v30, %v8975_v29  ;;  %v707_v46 = vsub.f32 %v7674_v28, %v8974_v25  ;;  %v9216_v0 = vand.u32 4294901760, %v7677_v48 }
  0xe7   : > { %v678_v22 = vand.u32 4294901760, %v677_v19  ;;  %5592 = vmatmul.mubr.f32.vlgmr.msra.gmra.mrb[0].mxu0 %v7143_v13  ;;  %5204 = vmatmul.mubr.f32.gmra.mrb[8].mxu1 %v668_v42  ;;  %v688_v39 = vand.u32 4294901760, %v687_v45  ;;  %v8978_v6 = vand.u32 4294901760, %v7691_v2  ;;  %v4725_v45 = vld [vmem:[%s8860_s2 + $0x80] sm:$0xff]  ;;  %v4726_v42 = vld [vmem:[%s8860_s2 + $0x88] sm:$0xff] }
  0xe8   : > { %5594 = vmatprep.mubr.f32.mxu0 %v7141_v63  ;;  %v698_v14 = vand.u32 4294901760, %v697_v31  ;;  %v717_v19 = vsub.f32 %v7677_v48, %v9216_v0  ;;  %6074 = vmatpush3.bf16.msra.mxu0 %v6793_v5  ;;  %v2974_v25 = vand.u32 4294901760, %v4725_v45  ;;  %v2977_v29 = vand.u32 4294901760, %v4726_v42 }
  0xe9   : > { %5206 = vmatprep.mubr.f32.mxu1 %v678_v22  ;;  %6076 = vmatprep.subr.bf16.mxu0 %v6823_v12  ;;  %v708_v22 = vand.u32 4294901760, %v707_v46  ;;  %v727_v31 = vsub.f32 %v7691_v2, %v8978_v6  ;;  %v7800_v6 = vld [vmem:[%s8860_s2 + $0xb8] sm:$0xff] }
  0xea   : > { %v718_v0 = vand.u32 4294901760, %v717_v19  ;;  %v7724_v46 = vpack.c.bf16 %v2977_v29, %v2974_v25  ;;  %v7764_v19 = vld [vmem:[%s8860_s2 + $0xa0] sm:$0xff] }
  0xeb   : > { %5595 = vmatmul.mubr.f32.gmra.mrb[2].mxu0 %v7164_v4  ;;  %5207 = vmatmul.mubr.f32.gmra.mrb[10].mxu1 %v688_v39  ;;  %v728_v5 = vand.u32 4294901760, %v727_v31  ;;  %v7771_v31 = vsub.f32 %v4725_v45, %v2974_v25 }
  0xec   : > { %5597 = vmatprep.mubr.f32.mxu0 %v7203_v27  ;;  %5209 = vmatprep.mubr.f32.mxu1 %v698_v14  ;;  %9217 = vst [vmem:[#allocation114_spill] sm:$0xff] %v7724_v46  ;;  %v9219_v14 = vld [vmem:[#allocation7_spill] sm:$0xff] }
  0xed   : > { %6078 = vmatpush3.bf16.msra.mxu0 %v6823_v12  ;;  %v3209_v45 = vand.u32 4294901760, %v7771_v31 }
  0xee   : > { %6080 = vmatprep.subr.bf16.mxu0 %v6890_v35 }
  0xef   : > { %5598 = vmatmul.mubr.f32.gmra.mrb[4].mxu0 %v7214_v32  ;;  %5210 = vmatmul.mubr.f32.gmra.mrb[12].mxu1 %v708_v22  ;;  %v7769_v22 = vld [vmem:[%s8860_s2 + $0xa8] sm:$0xff] }
  0xf0   : > { %5600 = vmatprep.mubr.f32.mxu0 %v7248_v47  ;;  %5212 = vmatprep.mubr.f32.mxu1 %v718_v0  ;;  %v7773_v0 = vsub.f32 %v4726_v42, %v2977_v29 }
  0xf1   : > { %6082 = vmatpush3.bf16.msra.mxu0 %v6890_v35  ;;  %v9000_v35 = vand.u32 4294901760, %v7800_v6 }
  0xf2   : > { %6084 = vmatprep.subr.bf16.mxu0 %v6904_v38  ;;  %v3216_v42 = vand.u32 4294901760, %v7773_v0 }
  0xf3   : > { %5601 = vmatmul.mubr.f32.gmra.mrb[6].mxu0 %v7228_v43  ;;  %5213 = vmatmul.mubr.f32.gmra.mrb[14].mxu1 %v728_v5  ;;  %v7747_v5 = vld [vmem:[%s8860_s2 + $0x90] sm:$0xff] }
  0xf4   : > { %5603 = vmatprep.mubr.f32.mxu0 %v7291_v33  ;;  %5231 = vmatprep.mubr.f32.mxu1 %v7358_v16  ;;  %v8979_v39 = vand.u32 4294901760, %v7747_v5 }
  0xf5   : > { %6086 = vmatpush3.bf16.msra.mxu0 %v6904_v38 }
  0xf6   : > { %6088 = vmatprep.subr.bf16.mxu0 %v7724_v46 }
  0xf7   : > { %5604 = vmatmul.mubr.f32.gmra.mrb[8].mxu0 %v7328_v53  ;;  %5232 = vmatmul.mubr.f32.vlgmr.msra.gmra.mrb[0].mxu1 %v7364_v56 }
  0xf8   : > { %5606 = vmatprep.mubr.f32.mxu0 %v7312_v9  ;;  %5930 = vmatpush3.bf16.msra.mxu1 %v7063_v49  ;;  %v7752_v49 = vld [vmem:[%s8860_s2 + $0x98] sm:$0xff] }
  0xf9   : > { %5234 = vmatprep.mubr.f32.mxu1 %v7377_v36  ;;  %5932 = vmatprep.subr.bf16.mxu1 %v7067_v50  ;;  %v9220_v29 = vand.u32 4294901760, %v7752_v49  ;;  %v9262_v36 = vld [vmem:[#allocation13_spill] sm:$0xff] }
  0xfa   : > { %v9263_v56 = vand.u32 4294901760, %v9262_v36 }
  0xfb   : > { %5607 = vmatmul.mubr.f32.gmra.mrb[10].mxu0 %v7445_v61  ;;  %5235 = vmatmul.mubr.f32.gmra.mrb[2].mxu1 %v7447_v41  ;;  %v7787_v25 = vpack.c.bf16 %v9220_v29, %v8979_v39  ;;  %v9222_v29 = vld [vmem:[#allocation37_spill] sm:$0xff] }
  0xfc   : > { %5609 = vmatprep.mubr.f32.mxu0 %v7400_v44  ;;  %5237 = vmatprep.mubr.f32.mxu1 %v7461_v15  ;;  %v2943_v39 = vsel %vm468_vm0, %v9222_v29, 0  ;;  %v3217_v29 = vsub.f32 %v7773_v0, %v3216_v42 }
  0xfd   : > { %5934 = vmatpush3.bf16.msra.mxu1 %v7067_v50  ;;  %v9218_v50 = vld [vmem:[#allocation29_spill] sm:$0xff]  ;;  %v7820_v12 = vand.u32 4294901760, %v2943_v39 }
  0xfe   : > { %5936 = vmatprep.subr.bf16.mxu1 %v7071_v51  ;;  %9221 = vst [vmem:[#allocation29_spill] sm:$0xff] %v7787_v25 }
  0xff   : > { %5610 = vmatmul.mubr.f32.gmra.mrb[12].mxu0 %v7513_v18  ;;  %5238 = vmatmul.mubr.f32.gmra.mrb[4].mxu1 %v7529_v55 }
 0x100   : > { %5612 = vmatprep.mubr.f32.mxu0 %v7484_v58  ;;  %5240 = vmatprep.mubr.f32.mxu1 %v7552_v11 }
 0x101   : > { %5938 = vmatpush3.bf16.msra.mxu1 %v7071_v51  ;;  %v8989_v51 = vand.u32 4294901760, %v7764_v19 }
 0x102   : > { %5940 = vmatprep.subr.bf16.mxu1 %v9218_v50 }
 0x103   : > { %5613 = vmatmul.mubr.f32.gmra.mrb[14].mxu0 %v7582_v21  ;;  %5241 = vmatmul.mubr.f32.gmra.mrb[6].mxu1 %v7321_v62  ;;  %v9252_v62 = vld [vmem:[#allocation87_spill] sm:$0xff] }
 0x104   : > { %5631 = vmatprep.mubr.f32.mxu0 %v7130_v23  ;;  %5243 = vmatprep.mubr.f32.mxu1 %v7614_v20 }
 0x105   : > { %5942 = vmatpush3.bf16.msra.mxu1 %v9218_v50  ;;  %v7795_v50 = vld [vmem:[%s8860_s2 + $0xb0] sm:$0xff] }
 0x106   : > { %5944 = vmatprep.subr.bf16.mxu1 %v9219_v14  ;;  %v9001_v38 = vand.u32 4294901760, %v7795_v50 }
 0x107   : > { %5632 = vmatmul.mubr.f32.vlgmr.msra.gmra.mrb[0].mxu0 %v7143_v13  ;;  %5244 = vmatmul.mubr.f32.gmra.mrb[8].mxu1 %v7616_v1  ;;  %v9223_v13 = vand.u32 4294901760, %v7769_v22  ;;  %v3218_v1 = vand.u32 4294901760, %v3217_v29 }
 0x108   : > { %5634 = vmatprep.mubr.f32.mxu0 %v7141_v63  ;;  %5246 = vmatprep.mubr.f32.mxu1 %v7634_v17  ;;  %v3210_v63 = vsub.f32 %v7771_v31, %v3209_v45 }
 0x109   : > { %6090 = vmatpush3.bf16.msra.mxu0 %v7724_v46  ;;  %v7812_v23 = vpack.c.bf16 %v9223_v13, %v8989_v51  ;;  %v9225_v13 = vld [vmem:[#allocation36_spill] sm:$0xff]  ;;  %v9264_v46 = vld [vmem:[#allocation14_spill] sm:$0xff] }
 0x10a   : > { %6092 = vmatprep.subr.bf16.mxu0 %v7787_v25  ;;  %v2941_v51 = vsel %vm468_vm0, %v9225_v13, 0  ;;  %v3211_v17 = vand.u32 4294901760, %v3210_v63  ;;  %v9229_v63 = vld [vmem:[#allocation47_spill] sm:$0xff]  ;;  %v9265_v16 = vand.u32 4294901760, %v9264_v46  ;;  %v9269_v46 = vld [vmem:[#allocation69_spill] sm:$0xff] }
 0x10b   : > { %9224 = vst [vmem:[#allocation7_spill] sm:$0xff] %v7812_v23  ;;  %5635 = vmatmul.mubr.f32.gmra.mrb[2].mxu0 %v7164_v4  ;;  %5247 = vmatmul.mubr.f32.gmra.mrb[10].mxu1 %v7638_v3  ;;  %v7833_v4 = vpack.c.bf16 %v9000_v35, %v9001_v38  ;;  %v7841_v13 = vand.u32 4294901760, %v2941_v51  ;;  %v2947_v29 = vsel %vm468_vm0, %v9229_v63, 0  ;;  %v9232_v63 = vld [vmem:[#allocation48_spill] sm:$0xff]  ;;  %v7877_v38 = vpack.c.bf16 %v3216_v42, %v3209_v45 }
 0x10c   : > { %5637 = vmatprep.mubr.f32.mxu0 %v7203_v27  ;;  %5249 = vmatprep.mubr.f32.mxu1 %v7649_v34  ;;  %v7837_v27 = vsub.f32 %v2943_v39, %v7820_v12  ;;  %v9228_v34 = vld [vmem:[#allocation32_spill] sm:$0xff]  ;;  %v7850_v39 = vpack.c.bf16 %v3218_v1, %v3211_v17  ;;  %v9233_v17 = vld [vmem:[#allocation74_spill] sm:$0xff]  ;;  %v9234_v1 = vand.u32 4294901760, %v7747_v5 }
 0x10d   : > { %6094 = vmatpush3.bf16.msra.mxu0 %v7787_v25  ;;  %9226 = vst [vmem:[#allocation37_spill] sm:$0xff] %v7833_v4  ;;  %v2945_v3 = vsel %vm468_vm0, %v9228_v34, 0  ;;  %v7858_v34 = vsub.f32 %v2941_v51, %v7841_v13  ;;  %9236 = vst [vmem:[#allocation48_spill] sm:$0xff] %v7877_v38  ;;  %v9243_v42 = vld [vmem:[#allocation56_spill] sm:$0xff]  ;;  %v9245_v38 = vld [vmem:[#allocation57_spill] sm:$0xff] }
 0x10e   : > { %6096 = vmatprep.subr.bf16.mxu0 %v7812_v23  ;;  %9227 = vst [vmem:[#allocation36_spill] sm:$0xff] %v7837_v27  ;;  %v7853_v35 = vand.u32 4294901760, %v2945_v3 }
 0x10f   : > { %5638 = vmatmul.mubr.f32.gmra.mrb[4].mxu0 %v7214_v32  ;;  %5250 = vmatmul.mubr.f32.gmra.mrb[12].mxu1 %v7654_v54  ;;  %9230 = vst [vmem:[#allocation32_spill] sm:$0xff] %v7858_v34  ;;  %v2949_v32 = vsel %vm468_vm0, %v9232_v63, 0  ;;  %v9246_v54 = vld [vmem:[#allocation9_spill] sm:$0xff] }
 0x110   : > { %5640 = vmatprep.mubr.f32.mxu0 %v7248_v47  ;;  %5252 = vmatprep.mubr.f32.mxu1 %v7656_v52  ;;  %v7861_v47 = vand.u32 4294901760, %v2947_v29 }
 0x111   : > { %6098 = vmatpush3.bf16.msra.mxu0 %v7812_v23 }
 0x112   : > { %6100 = vmatprep.subr.bf16.mxu0 %v7833_v4  ;;  %9231 = vst [vmem:[#allocation47_spill] sm:$0xff] %v7861_v47 }
 0x113   : > { %5641 = vmatmul.mubr.f32.gmra.mrb[6].mxu0 %v7228_v43  ;;  %5253 = vmatmul.mubr.f32.gmra.mrb[14].mxu1 %v7679_v37  ;;  %v7870_v43 = vsub.f32 %v7747_v5, %v9234_v1  ;;  %v9237_v37 = vld [vmem:[#allocation62_spill] sm:$0xff]  ;;  %v7888_v5 = vand.u32 4294901760, %v2949_v32  ;;  %v9240_v1 = vld [vmem:[#allocation77_spill] sm:$0xff] }
 0x114   : > { %5643 = vmatprep.mubr.f32.mxu0 %v7291_v33  ;;  %5271 = vmatprep.mubr.f32.mxu1 %v9233_v17  ;;  %v9235_v33 = vand.u32 4294901760, %v7752_v49  ;;  %v7882_v63 = vsel %vm468_vm0, %v9237_v37, 0  ;;  %v7899_v37 = vsub.f32 %v2947_v29, %v7861_v47 }
 0x115   : > { %6102 = vmatpush3.bf16.msra.mxu0 %v7833_v4  ;;  %v7886_v4 = vsub.f32 %v2945_v3, %v7853_v35  ;;  %9239 = vst [vmem:[#allocation62_spill] sm:$0xff] %v7888_v5  ;;  %v2951_v3 = vsel %vm468_vm0, %v9243_v42, 0  ;;  %v9248_v42 = vand.u32 4294901760, %v7769_v22  ;;  %v7921_v25 = vand.u32 4294901760, %v7882_v63 }
 0x116   : > { %v7875_v51 = vsub.f32 %v7752_v49, %v9235_v33  ;;  %6104 = vmatprep.subr.bf16.mxu0 %v7850_v39  ;;  %v9241_v49 = vand.u32 4294901760, %v7837_v27  ;;  %9242 = vst [vmem:[#allocation77_spill] sm:$0xff] %v7899_v37  ;;  %v3223_v33 = vand.u32 4294901760, %v7870_v43  ;;  %v7928_v20 = vand.u32 4294901760, %v2951_v3 }
 0x117   : > { %5644 = vmatmul.mubr.f32.gmra.mrb[8].mxu0 %v7328_v53  ;;  %9238 = vst [vmem:[#allocation74_spill] sm:$0xff] %v7886_v4  ;;  %5272 = vmatmul.mubr.f32.vlgmr.msra.gmra.mrb[0].mxu1 %v9240_v1  ;;  %v9244_v53 = vld [vmem:[#allocation78_spill] sm:$0xff]  ;;  %v7918_v23 = vsub.f32 %v7769_v22, %v9248_v42  ;;  %9249 = vst [vmem:[#allocation56_spill] sm:$0xff] %v7921_v25 }
 0x118   : > { %5646 = vmatprep.mubr.f32.mxu0 %v7312_v9  ;;  %v7896_v45 = vsub.f32 %v7837_v27, %v9241_v49  ;;  %5946 = vmatpush3.bf16.msra.mxu1 %v9219_v14  ;;  %v2953_v9 = vsel %vm468_vm0, %v9245_v38, 0  ;;  %v3230_v52 = vand.u32 4294901760, %v7875_v51  ;;  %v9247_v49 = vand.u32 4294901760, %v7764_v19  ;;  %9251 = vst [vmem:[#allocation57_spill] sm:$0xff] %v7928_v20  ;;  %v9255_v38 = vld [vmem:[#allocation89_spill] sm:$0xff] }
 0x119   : > { %5274 = vmatprep.mubr.f32.mxu1 %v9244_v53  ;;  %5948 = vmatprep.subr.bf16.mxu1 %v9246_v54  ;;  %v7926_v27 = vsub.f32 %v2949_v32, %v7888_v5  ;;  %v9256_v32 = vld [vmem:[#allocation68_spill] sm:$0xff]  ;;  %v3224_v55 = vsub.f32 %v7870_v43, %v3223_v33  ;;  %v3244_v42 = vand.u32 4294901760, %v7918_v23  ;;  %v7969_v5 = vpack.c.bf16 %v9265_v16, %v9263_v56 }
 0x11a   : > { %v7913_v29 = vsub.f32 %v7764_v19, %v9247_v49  ;;  %v9253_v19 = vand.u32 4294901760, %v7858_v34  ;;  %v3060_v49 = vand.u32 4294901760, %v7896_v45  ;;  %v2957_v11 = vsel %vm468_vm0, %v9256_v32, 0 }
 0x11b   : > { %5647 = vmatmul.mubr.f32.gmra.mrb[10].mxu0 %v7445_v61  ;;  %9250 = vst [vmem:[#allocation78_spill] sm:$0xff] %v7926_v27  ;;  %5275 = vmatmul.mubr.f32.gmra.mrb[2].mxu1 %v9252_v62  ;;  %v7937_v61 = vand.u32 4294901760, %v2953_v9  ;;  %v7945_v15 = vpack.c.bf16 %v3230_v52, %v3223_v33  ;;  %v7982_v36 = vand.u32 4294901760, %v2957_v11  ;;  %v3225_v16 = vand.u32 4294901760, %v3224_v55 }
 0x11c   : > { %5649 = vmatprep.mubr.f32.mxu0 %v7400_v44  ;;  %v3049_v22 = vsub.f32 %v7858_v34, %v9253_v19  ;;  %5277 = vmatprep.mubr.f32.mxu1 %v9255_v38  ;;  %v3231_v44 = vsub.f32 %v7875_v51, %v3230_v52  ;;  %v9258_v19 = vld [vmem:[#allocation11_spill] sm:$0xff]  ;;  %v3237_v45 = vand.u32 4294901760, %v7913_v29  ;;  %v9259_v34 = vand.u32 4294901760, %v7795_v50 }
 0x11d   : > { %9254 = vst [vmem:[#allocation87_spill] sm:$0xff] %v7937_v61  ;;  %5950 = vmatpush3.bf16.msra.mxu1 %v9246_v54  ;;  %9257 = vst [vmem:[#allocation89_spill] sm:$0xff] %v7945_v15  ;;  %v9260_v54 = vand.u32 4294901760, %v7800_v6  ;;  %v9261_v52 = vand.u32 4294901760, %v7886_v4  ;;  %v9270_v15 = vld [vmem:[#allocation81_spill] sm:$0xff] }
 0x11e   : > { %5952 = vmatprep.subr.bf16.mxu1 %v9258_v19  ;;  %v7953_v41 = vsub.f32 %v7795_v50, %v9259_v34  ;;  %v7972_v50 = vsub.f32 %v2951_v3, %v7928_v20  ;;  %9268 = vst [vmem:[#allocation13_spill] sm:$0xff] %v7982_v36  ;;  %v3232_v56 = vand.u32 4294901760, %v3231_v44  ;;  %v2959_v3 = vsel %vm468_vm0, %v9269_v46, 0 }
 0x11f   : > { %v7958_v32 = vsub.f32 %v7800_v6, %v9260_v54  ;;  %5650 = vmatmul.mubr.f32.gmra.mrb[12].mxu0 %v7513_v18  ;;  %v3069_v33 = vsub.f32 %v7886_v4, %v9261_v52  ;;  %5278 = vmatmul.mubr.f32.gmra.mrb[4].mxu1 %v7548_v59  ;;  %v3050_v6 = vand.u32 4294901760, %v3049_v22  ;;  %v9266_v54 = vand.u32 4294901760, %v7899_v37  ;;  %v9273_v4 = vld [vmem:[#allocation82_spill] sm:$0xff] }
 0x120   : > { %5652 = vmatprep.mubr.f32.mxu0 %v7484_v58  ;;  %v7980_v52 = vsub.f32 %v2953_v9, %v7937_v61  ;;  %5280 = vmatprep.mubr.f32.mxu1 %v7561_v24  ;;  %v2961_v22 = vsel %vm468_vm0, %v9270_v15, 0  ;;  %v9271_v58 = vld [vmem:[#allocation12_spill] sm:$0xff]  ;;  %v3245_v9 = vsub.f32 %v7918_v23, %v3244_v42  ;;  %v3251_v18 = vand.u32 4294901760, %v7953_v41 }
 0x121   : > { %v3079_v34 = vsub.f32 %v7899_v37, %v9266_v54  ;;  %5954 = vmatpush3.bf16.msra.mxu1 %v9258_v19  ;;  %v3238_v54 = vsub.f32 %v7913_v29, %v3237_v45  ;;  %v3258_v37 = vand.u32 4294901760, %v7958_v32  ;;  %v3070_v55 = vand.u32 4294901760, %v3069_v33 }
 0x122   : > { %9267 = vst [vmem:[#allocation68_spill] sm:$0xff] %v7980_v52  ;;  %5956 = vmatprep.subr.bf16.mxu1 %v9271_v58  ;;  %v9272_v44 = vand.u32 4294901760, %v7926_v27  ;;  %v8002_v15 = vsub.f32 %v7882_v63, %v7921_v25  ;;  %v8007_v61 = vsub.f32 %v2957_v11, %v7982_v36  ;;  %v8011_v33 = vand.u32 4294901760, %v2961_v22 }
 0x123   : > { %5653 = vmatmul.mubr.f32.gmra.mrb[14].mxu0 %v7582_v21  ;;  %5281 = vmatmul.mubr.f32.gmra.mrb[6].mxu1 %v7565_v60  ;;  %v8009_v21 = vand.u32 4294901760, %v2959_v3  ;;  %v2963_v63 = vsel %vm468_vm0, %v9273_v4, 0  ;;  %v8019_v25 = vpack.c.bf16 %v3244_v42, %v3237_v45  ;;  %v3239_v11 = vand.u32 4294901760, %v3238_v54 }
 0x124   : > { %v3089_v46 = vsub.f32 %v7926_v27, %v9272_v44  ;;  %5671 = vmatprep.mubr.f32.mxu0 %v3050_v6  ;;  %5283 = vmatprep.mubr.f32.mxu1 %v7627_v57  ;;  %v6107_v44 = vpack.c.bf16 %v3232_v56, %v3225_v16  ;;  %v9274_v27 = vld [vmem:[#allocation97_spill] sm:$0xff]  ;;  %v3246_v19 = vand.u32 4294901760, %v3245_v9  ;;  %v3252_v36 = vsub.f32 %v7953_v41, %v3251_v18 }
 0x125   : > { %5958 = vmatpush3.bf16.msra.mxu1 %v9271_v58  ;;  %v2965_v6 = vsel %vm468_vm0, %v9274_v27, 0  ;;  %9275 = vst [vmem:[#allocation14_spill] sm:$0xff] %v8019_v25  ;;  %v3259_v20 = vsub.f32 %v7958_v32, %v3258_v37  ;;  %v3080_v47 = vand.u32 4294901760, %v3079_v34  ;;  %v9276_v27 = vand.u32 4294901760, %v7972_v50 }
 0x126   : > { %5960 = vmatprep.subr.bf16.mxu1 %v7969_v5  ;;  %v3090_v4 = vand.u32 4294901760, %v3089_v46  ;;  %v9277_v45 = vand.u32 4294901760, %v7980_v52  ;;  %v8039_v34 = vsub.f32 %v2961_v22, %v8011_v33  ;;  %v8041_v9 = vand.u32 4294901760, %v2963_v63 }
 0x127   : > { %5672 = vmatmul.mubr.f32.vlgmr.msra.gmra.mrb[0].mxu0 %v3060_v49  ;;  %5284 = vmatmul.mubr.f32.gmra.mrb[8].mxu1 %v7630_v7  ;;  %v3099_v42 = vsub.f32 %v7972_v50, %v9276_v27  ;;  %v8036_v49 = vsub.f32 %v2959_v3, %v8009_v21  ;;  %v6111_v46 = vpack.c.bf16 %v3246_v19, %v3239_v11  ;;  %v9278_v27 = vld [vmem:[#allocation98_spill] sm:$0xff]  ;;  %v3253_v54 = vand.u32 4294901760, %v3252_v36 }
 0x128   : > { %5674 = vmatprep.mubr.f32.mxu0 %v3070_v55  ;;  %v3109_v56 = vsub.f32 %v7980_v52, %v9277_v45  ;;  %5286 = vmatprep.mubr.f32.mxu1 %v7647_v10  ;;  %v8043_v55 = vand.u32 4294901760, %v2965_v6  ;;  %v2967_v45 = vsel %vm468_vm0, %v9278_v27, 0  ;;  %v3260_v16 = vand.u32 4294901760, %v3259_v20 }
 0x129   : > { %6106 = vmatpush3.bf16.msra.mxu0 %v7850_v39  ;;  %v9279_v39 = vand.u32 4294901760, %v8002_v15  ;;  %v2969_v22 = vsel %vm468_vm0, %v7591_v8, 0  ;;  %v3100_v25 = vand.u32 4294901760, %v3099_v42  ;;  %v9280_v19 = vand.u32 4294901760, %v8007_v61 }
 0x12a   : > { %6108 = vmatprep.subr.bf16.mxu0 %v6107_v44  ;;  %v3110_v52 = vand.u32 4294901760, %v3109_v56  ;;  %v8056_v27 = vpack.c.bf16 %v3258_v37, %v3251_v18  ;;  %v9074_v20 = vand.u32 4294901760, %v8039_v34  ;;  %v8062_v8 = vsub.f32 %v2963_v63, %v8041_v9 }
 0x12b   : > { %5675 = vmatmul.mubr.f32.gmra.mrb[2].mxu0 %v3080_v47  ;;  %v3119_v3 = vsub.f32 %v8002_v15, %v9279_v39  ;;  %5287 = vmatmul.mubr.f32.gmra.mrb[10].mxu1 %v7652_v26  ;;  %v3129_v11 = vsub.f32 %v8007_v61, %v9280_v19  ;;  %v3138_v47 = vand.u32 4294901760, %v8036_v49  ;;  %v8064_v36 = vand.u32 4294901760, %v2967_v45 }
 0x12c   : > { %5677 = vmatprep.mubr.f32.mxu0 %v3090_v4  ;;  %5289 = vmatprep.mubr.f32.mxu1 %v7669_v30  ;;  %v8067_v4 = vsub.f32 %v2965_v6, %v8043_v55  ;;  %v8069_v42 = vand.u32 4294901760, %v2969_v22  ;;  %v2971_v18 = vsel %vm468_vm0, %v7594_v40, 0  ;;  %v6115_v37 = vpack.c.bf16 %v3260_v16, %v3253_v54 }
 0x12d   : > { %6110 = vmatpush3.bf16.msra.mxu0 %v6107_v44  ;;  %v3120_v44 = vand.u32 4294901760, %v3119_v3  ;;  %v3130_v56 = vand.u32 4294901760, %v3129_v11  ;;  %v3139_v63 = vsub.f32 %v8036_v49, %v3138_v47  ;;  %v3158_v6 = vand.u32 4294901760, %v8062_v8  ;;  %v9282_v11 = vld [vmem:[#allocation17_spill] sm:$0xff] }
 0x12e   : > { %6112 = vmatprep.subr.bf16.mxu0 %v6111_v46  ;;  %v8080_v39 = vsub.f32 %v2967_v45, %v8064_v36  ;;  %v8082_v40 = vand.u32 4294901760, %v2971_v18  ;;  %v8089_v16 = vsub.f32 %v2969_v22, %v8069_v42  ;;  %v6119_v54 = vpack.c.bf16 %v7773_v0, %v7771_v31  ;;  %v9284_v0 = vld [vmem:[#allocation18_spill] sm:$0xff] }
 0x12f   : > { %5678 = vmatmul.mubr.f32.gmra.mrb[4].mxu0 %v3100_v25  ;;  %5290 = vmatmul.mubr.f32.gmra.mrb[12].mxu1 %v7674_v28  ;;  %v3149_v25 = vsub.f32 %v8039_v34, %v9074_v20  ;;  %v3140_v45 = vand.u32 4294901760, %v3139_v63  ;;  %v3159_v3 = vsub.f32 %v8062_v8, %v3158_v6  ;;  %v9283_v31 = vand.u32 4294901760, %v9282_v11 }
 0x130   : > { %5680 = vmatprep.mubr.f32.mxu0 %v3110_v52  ;;  %5292 = vmatprep.mubr.f32.mxu1 %v7677_v48  ;;  %v3168_v52 = vand.u32 4294901760, %v8067_v4  ;;  %v9077_v19 = vand.u32 4294901760, %v8080_v39  ;;  %v8101_v22 = vsub.f32 %v2971_v18, %v8082_v40  ;;  %v9076_v63 = vand.u32 4294901760, %v8089_v16 }
 0x131   : > { %6114 = vmatpush3.bf16.msra.mxu0 %v6111_v46  ;;  %v9281_v46 = vand.u32 4294901760, %v9233_v17  ;;  %v9287_v18 = vand.u32 4294901760, %v9244_v53  ;;  %v9292_v53 = vand.u32 4294901760, %v9252_v62  ;;  %v9298_v62 = vand.u32 4294901760, %v7548_v59 }
 0x132   : > { %6116 = vmatprep.subr.bf16.mxu0 %v6115_v37  ;;  %v3169_v17 = vsub.f32 %v8067_v4, %v3168_v52  ;;  %v9075_v11 = vand.u32 4294901760, %v8101_v22  ;;  %v6123_v59 = vpack.c.bf16 %v7875_v51, %v7870_v43  ;;  %v9306_v43 = vld [vmem:[#allocation62_spill] sm:$0xff]  ;;  %v9308_v51 = vld [vmem:[#allocation57_spill] sm:$0xff] }
 0x133   : > { %5681 = vmatmul.mubr.f32.gmra.mrb[6].mxu0 %v3120_v44  ;;  %5293 = vmatmul.mubr.f32.gmra.mrb[14].mxu1 %v7691_v2  ;;  %v9285_v44 = vand.u32 4294901760, %v9284_v0  ;;  %v9288_v0 = vld [vmem:[#allocation23_spill] sm:$0xff] }
 0x134   : > { %5683 = vmatprep.mubr.f32.mxu0 %v3130_v56  ;;  %5311 = vmatprep.mubr.f32.mxu1 %v9281_v46  ;;  %v3150_v56 = vand.u32 4294901760, %v3149_v25  ;;  %v9286_v46 = vand.u32 4294901760, %v9240_v1  ;;  %v3179_v25 = vsub.f32 %v8080_v39, %v9077_v19 }
 0x135   : > { %6118 = vmatpush3.bf16.msra.mxu0 %v6115_v37  ;;  %v5963_v20 = vpack.c.bf16 %v9285_v44, %v9283_v31  ;;  %v3160_v37 = vand.u32 4294901760, %v3159_v3  ;;  %v3170_v31 = vand.u32 4294901760, %v3169_v17  ;;  %v9290_v44 = vld [vmem:[#allocation24_spill] sm:$0xff]  ;;  %v9293_v3 = vand.u32 4294901760, %v9255_v38 }
 0x136   : > { %6120 = vmatprep.subr.bf16.mxu0 %v6119_v54  ;;  %v9291_v1 = vand.u32 4294901760, %v9290_v44  ;;  %v3199_v17 = vsub.f32 %v8101_v22, %v9075_v11  ;;  %v9296_v44 = vld [vmem:[#allocation28_spill] sm:$0xff]  ;;  %v9299_v38 = vand.u32 4294901760, %v7561_v24  ;;  %v9302_v24 = vand.u32 4294901760, %v7630_v7 }
 0x137   : > { %5684 = vmatmul.mubr.f32.gmra.mrb[8].mxu0 %v3140_v45  ;;  %5312 = vmatmul.mubr.f32.vlgmr.msra.gmra.mrb[0].mxu1 %v9286_v46  ;;  %v9289_v45 = vand.u32 4294901760, %v9288_v0  ;;  %v9294_v0 = vld [vmem:[#allocation27_spill] sm:$0xff]  ;;  %v9307_v7 = vand.u32 4294901760, %v7669_v30  ;;  %v9313_v30 = vand.u32 4294901760, %v7691_v2  ;;  %v9320_v2 = vld [vmem:[#allocation86_spill] sm:$0xff]  ;;  %v9348_v11 = vld [vmem:[#allocation16_spill] sm:$0xff] }
 0x138   : > { %5686 = vmatprep.mubr.f32.mxu0 %v3150_v56  ;;  %5962 = vmatpush3.bf16.msra.mxu1 %v7969_v5  ;;  %v3189_v5 = vsub.f32 %v8089_v16, %v9076_v63  ;;  %v3180_v56 = vand.u32 4294901760, %v3179_v25  ;;  %v9300_v25 = vand.u32 4294901760, %v7565_v60  ;;  %v9303_v60 = vand.u32 4294901760, %v7647_v10 }
 0x139   : > { %5314 = vmatprep.mubr.f32.mxu1 %v9287_v18  ;;  %5964 = vmatprep.subr.bf16.mxu1 %v5963_v20  ;;  %v5967_v46 = vpack.c.bf16 %v9291_v1, %v9289_v45  ;;  %v9295_v45 = vand.u32 4294901760, %v9294_v0  ;;  %v9297_v1 = vand.u32 4294901760, %v9296_v44  ;;  %v6131_v10 = vpack.c.bf16 %v7958_v32, %v7953_v41  ;;  %v9315_v41 = vld [vmem:[#allocation72_spill] sm:$0xff]  ;;  %v9316_v32 = vld [vmem:[#allocation114_spill] sm:$0xff]  ;;  %v9325_v0 = vld [vmem:[#allocation65_spill] sm:$0xff] }
 0x13a   : > { %v3190_v18 = vand.u32 4294901760, %v3189_v5  ;;  %v9305_v5 = vand.u32 4294901760, %v7652_v26  ;;  %v9311_v26 = vand.u32 4294901760, %v7677_v48  ;;  %v9318_v48 = vld [vmem:[#allocation75_spill] sm:$0xff]  ;;  %v9327_v44 = vld [vmem:[#allocation106_spill] sm:$0xff]  ;;  %v9349_v63 = vand.u32 4294901760, %v9348_v11 }
 0x13b   : > { %5687 = vmatmul.mubr.f32.gmra.mrb[10].mxu0 %v3160_v37  ;;  %5315 = vmatmul.mubr.f32.gmra.mrb[2].mxu1 %v9292_v53  ;;  %v5971_v37 = vpack.c.bf16 %v9297_v1, %v9295_v45  ;;  %v9314_v53 = vld [vmem:[#allocation13_spill] sm:$0xff]  ;;  %v9326_v45 = vld [vmem:[#allocation32_spill] sm:$0xff] }
 0x13c   : > { %5689 = vmatprep.mubr.f32.mxu0 %v3170_v31  ;;  %5317 = vmatprep.mubr.f32.mxu1 %v9293_v3  ;;  %v9301_v31 = vand.u32 4294901760, %v7627_v57  ;;  %v6127_v57 = vpack.c.bf16 %v7918_v23, %v7913_v29  ;;  %v9310_v23 = vld [vmem:[#allocation87_spill] sm:$0xff]  ;;  %v9312_v29 = vld [vmem:[#allocation56_spill] sm:$0xff]  ;;  %v9319_v3 = vld [vmem:[#allocation9_spill] sm:$0xff]  ;;  %v1959_v19 = vsub.f32 %v9348_v11, %v9349_v63 }
 0x13d   : > { %5966 = vmatpush3.bf16.msra.mxu1 %v5963_v20  ;;  %v3200_v20 = vand.u32 4294901760, %v3199_v17  ;;  %v9322_v17 = vld [vmem:[#allocation11_spill] sm:$0xff]  ;;  %v9328_v1 = vld [vmem:[#allocation5_spill] sm:$0xff]  ;;  %v9351_v63 = vld [vmem:[#allocation10_spill] sm:$0xff] }
 0x13e   : > { %5968 = vmatprep.subr.bf16.mxu1 %v5967_v46 }
 0x13f   : > { %5690 = vmatmul.mubr.f32.gmra.mrb[12].mxu0 %v3180_v56  ;;  %5318 = vmatmul.mubr.f32.gmra.mrb[4].mxu1 %v9298_v62  ;;  %v9321_v56 = vld [vmem:[#allocation88_spill] sm:$0xff]  ;;  %v9330_v62 = vld [vmem:[#allocation107_spill] sm:$0xff] }
 0x140   : > { %5692 = vmatprep.mubr.f32.mxu0 %v3190_v18  ;;  %5320 = vmatprep.mubr.f32.mxu1 %v9299_v38  ;;  %v9323_v18 = vld [vmem:[#allocation99_spill] sm:$0xff]  ;;  %v9331_v38 = vld [vmem:[#allocation74_spill] sm:$0xff] }
 0x141   : > { %5970 = vmatpush3.bf16.msra.mxu1 %v5967_v46  ;;  %v9304_v46 = vld [vmem:[#allocation47_spill] sm:$0xff] }
 0x142   : > { %5972 = vmatprep.subr.bf16.mxu1 %v5971_v37 }
 0x143   : > { %5693 = vmatmul.mubr.f32.gmra.mrb[14].mxu0 %v3200_v20  ;;  %5321 = vmatmul.mubr.f32.gmra.mrb[6].mxu1 %v9300_v25  ;;  %v9332_v20 = vld [vmem:[#allocation108_spill] sm:$0xff]  ;;  %v9333_v25 = vld [vmem:[#allocation29_spill] sm:$0xff] }
 0x144   : > { %5711 = vmatprep.mubr.f32.mxu0 %v7841_v13  ;;  %5323 = vmatprep.mubr.f32.mxu1 %v9301_v31  ;;  %v9334_v31 = vld [vmem:[#allocation77_spill] sm:$0xff] }
 0x145   : > { %5974 = vmatpush3.bf16.msra.mxu1 %v5971_v37  ;;  %v9329_v37 = vld [vmem:[#allocation36_spill] sm:$0xff] }
 0x146   : > { %5976 = vmatprep.subr.bf16.mxu1 %v9219_v14 }
 0x147   : > { %5712 = vmatmul.mubr.f32.vlgmr.msra.gmra.mrb[0].mxu0 %v7820_v12  ;;  %5324 = vmatmul.mubr.f32.gmra.mrb[8].mxu1 %v9302_v24  ;;  %v9336_v24 = vld [vmem:[#allocation78_spill] sm:$0xff] }
 0x148   : > { %5714 = vmatprep.mubr.f32.mxu0 %v7853_v35  ;;  %5326 = vmatprep.mubr.f32.mxu1 %v9303_v60  ;;  %v9338_v60 = vld [vmem:[#allocation7_spill] sm:$0xff] }
 0x149   : > { %6122 = vmatpush3.bf16.msra.mxu0 %v6119_v54  ;;  %v9309_v54 = vand.u32 4294901760, %v7674_v28  ;;  %v9317_v28 = vld [vmem:[#allocation73_spill] sm:$0xff] }
 0x14a   : > { %6124 = vmatprep.subr.bf16.mxu0 %v6123_v59 }
 0x14b   : > { %5715 = vmatmul.mubr.f32.gmra.mrb[2].mxu0 %v9304_v46  ;;  %5327 = vmatmul.mubr.f32.gmra.mrb[10].mxu1 %v9305_v5  ;;  %v9340_v5 = vld [vmem:[#allocation68_spill] sm:$0xff] }
 0x14c   : > { %5717 = vmatprep.mubr.f32.mxu0 %v9306_v43  ;;  %5329 = vmatprep.mubr.f32.mxu1 %v9307_v7  ;;  %v9341_v7 = vld [vmem:[#allocation112_spill] sm:$0xff] }
 0x14d   : > { %6126 = vmatpush3.bf16.msra.mxu0 %v6123_v59  ;;  %v9335_v59 = vld [vmem:[#allocation109_spill] sm:$0xff] }
 0x14e   : > { %6128 = vmatprep.subr.bf16.mxu0 %v6127_v57 }
 0x14f   : > { %5718 = vmatmul.mubr.f32.gmra.mrb[4].mxu0 %v9308_v51  ;;  %5330 = vmatmul.mubr.f32.gmra.mrb[12].mxu1 %v9309_v54  ;;  %v9343_v54 = vld [vmem:[#allocation113_spill] sm:$0xff] }
 0x150   : > { %5720 = vmatprep.mubr.f32.mxu0 %v9310_v23  ;;  %5332 = vmatprep.mubr.f32.mxu1 %v9311_v26  ;;  %v9344_v26 = vld [vmem:[#allocation48_spill] sm:$0xff] }
 0x151   : > { %6130 = vmatpush3.bf16.msra.mxu0 %v6127_v57  ;;  %v9339_v57 = vld [vmem:[#allocation111_spill] sm:$0xff] }
 0x152   : > { %6132 = vmatprep.subr.bf16.mxu0 %v6131_v10 }
 0x153   : > { %5721 = vmatmul.mubr.f32.gmra.mrb[6].mxu0 %v9312_v29  ;;  %5333 = vmatmul.mubr.f32.gmra.mrb[14].mxu1 %v9313_v30  ;;  %v9345_v30 = vld [vmem:[#allocation6_spill] sm:$0xff] }
 0x154   : > { %5723 = vmatprep.mubr.f32.mxu0 %v9314_v53  ;;  %5351 = vmatprep.mubr.f32.mxu1 %v9315_v41 }
 0x155   : > { %6134 = vmatpush3.bf16.msra.mxu0 %v6131_v10  ;;  %v9342_v10 = vld [vmem:[#allocation37_spill] sm:$0xff] }
 0x156   : > { %6136 = vmatprep.subr.bf16.mxu0 %v9316_v32 }
 0x157   : > { %5724 = vmatmul.mubr.f32.gmra.mrb[8].mxu0 %v8009_v21  ;;  %5352 = vmatmul.mubr.f32.vlgmr.msra.gmra.mrb[0].mxu1 %v9317_v28 }
 0x158   : > { %5726 = vmatprep.mubr.f32.mxu0 %v8011_v33  ;;  %5978 = vmatpush3.bf16.msra.mxu1 %v9219_v14  ;;  %v9324_v14 = vld [vmem:[#allocation102_spill] sm:$0xff] }
 0x159   : > { %5354 = vmatprep.mubr.f32.mxu1 %v9318_v48  ;;  %5980 = vmatprep.subr.bf16.mxu1 %v9319_v3 }
 0x15b   : > { %5727 = vmatmul.mubr.f32.gmra.mrb[10].mxu0 %v8041_v9  ;;  %5355 = vmatmul.mubr.f32.gmra.mrb[2].mxu1 %v9320_v2 }
 0x15c   : > { %5729 = vmatprep.mubr.f32.mxu0 %v8043_v55  ;;  %5357 = vmatprep.mubr.f32.mxu1 %v9321_v56 }
 0x15d   : > { %5982 = vmatpush3.bf16.msra.mxu1 %v9319_v3  ;;  %v9346_v3 = vld [vmem:[#allocation15_spill] sm:$0xff] }
 0x15e   : > { %5984 = vmatprep.subr.bf16.mxu1 %v9322_v17 }
 0x15f   : > { %5730 = vmatmul.mubr.f32.gmra.mrb[12].mxu0 %v8064_v36  ;;  %5358 = vmatmul.mubr.f32.gmra.mrb[4].mxu1 %v9323_v18 }
 0x160   : > { %5732 = vmatprep.mubr.f32.mxu0 %v8069_v42  ;;  %5360 = vmatprep.mubr.f32.mxu1 %v9324_v14 }
 0x161   : > { %5986 = vmatpush3.bf16.msra.mxu1 %v9322_v17  ;;  %v9347_v17 = vand.u32 4294901760, %v9346_v3 }
 0x162   : > { %5988 = vmatprep.subr.bf16.mxu1 %v9271_v58 }
 0x163   : > { %5733 = vmatmul.mubr.f32.gmra.mrb[14].mxu0 %v8082_v40  ;;  %5361 = vmatmul.mubr.f32.gmra.mrb[6].mxu1 %v9325_v0 }
 0x164   : > { %5751 = vmatprep.mubr.f32.mxu0 %v9326_v45  ;;  %5363 = vmatprep.mubr.f32.mxu1 %v9327_v44 }
 0x165   : > { %5990 = vmatpush3.bf16.msra.mxu1 %v9271_v58  ;;  %v9337_v58 = vld [vmem:[#allocation110_spill] sm:$0xff] }
 0x166   : > { %5992 = vmatprep.subr.bf16.mxu1 %v9328_v1 }
 0x167   : > { %5752 = vmatmul.mubr.f32.vlgmr.msra.gmra.mrb[0].mxu0 %v9329_v37  ;;  %5364 = vmatmul.mubr.f32.gmra.mrb[8].mxu1 %v9330_v62 }
 0x168   : > { %5754 = vmatprep.mubr.f32.mxu0 %v9331_v38  ;;  %5366 = vmatprep.mubr.f32.mxu1 %v9332_v20 }
 0x169   : > { %6138 = vmatpush3.bf16.msra.mxu0 %v9316_v32 }
 0x16a   : > { %6140 = vmatprep.subr.bf16.mxu0 %v9333_v25 }
 0x16b   : > { %5755 = vmatmul.mubr.f32.gmra.mrb[2].mxu0 %v9334_v31  ;;  %5367 = vmatmul.mubr.f32.gmra.mrb[10].mxu1 %v9335_v59 }
 0x16c   : > { %5757 = vmatprep.mubr.f32.mxu0 %v9336_v24  ;;  %5369 = vmatprep.mubr.f32.mxu1 %v9337_v58 }
 0x16d   : > { %6142 = vmatpush3.bf16.msra.mxu0 %v9333_v25 }
 0x16e   : > { %6144 = vmatprep.subr.bf16.mxu0 %v9338_v60 }
 0x16f   : > { %5758 = vmatmul.mubr.f32.gmra.mrb[4].mxu0 %v7972_v50  ;;  %5370 = vmatmul.mubr.f32.gmra.mrb[12].mxu1 %v9339_v57 }
 0x170   : > { %5760 = vmatprep.mubr.f32.mxu0 %v9340_v5  ;;  %5372 = vmatprep.mubr.f32.mxu1 %v9341_v7 }
 0x171   : > { %6146 = vmatpush3.bf16.msra.mxu0 %v9338_v60 }
 0x172   : > { %6148 = vmatprep.subr.bf16.mxu0 %v9342_v10 }
 0x173   : > { %5761 = vmatmul.mubr.f32.gmra.mrb[6].mxu0 %v8002_v15  ;;  %5373 = vmatmul.mubr.f32.gmra.mrb[14].mxu1 %v9343_v54 }
 0x174   : > { %5763 = vmatprep.mubr.f32.mxu0 %v8007_v61  ;;  %5391 = vmatprep.mubr.f32.mxu1 %v9315_v41  ;;  %v1952_v41 = vsub.f32 %v9346_v3, %v9347_v17 }
 0x175   : > { %6150 = vmatpush3.bf16.msra.mxu0 %v9342_v10 }
 0x176   : > { %6152 = vmatprep.subr.bf16.mxu0 %v9344_v26 }
 0x177   : > { %5764 = vmatmul.mubr.f32.gmra.mrb[8].mxu0 %v8036_v49  ;;  %5392 = vmatmul.mubr.f32.vlgmr.msra.gmra.mrb[0].mxu1 %v9317_v28  ;;  %v9350_v28 = vld [vmem:[#allocation8_spill] sm:$0xff] }
 0x178   : > { %5766 = vmatprep.mubr.f32.mxu0 %v8039_v34  ;;  %5994 = vmatpush3.bf16.msra.mxu1 %v9328_v1  ;;  %v1960_v1 = vand.u32 4294901760, %v1959_v19  ;;  %v9353_v19 = vand.u32 4294901760, %v9329_v37 }
 0x179   : > { %5394 = vmatprep.mubr.f32.mxu1 %v9318_v48  ;;  %5996 = vmatprep.subr.bf16.mxu1 %v9345_v30  ;;  %v1953_v48 = vand.u32 4294901760, %v1952_v41  ;;  %v9367_v41 = vld [vmem:[#allocation42_spill] sm:$0xff] }
 0x17b   : > { %5767 = vmatmul.mubr.f32.gmra.mrb[10].mxu0 %v8062_v8  ;;  %5395 = vmatmul.mubr.f32.gmra.mrb[2].mxu1 %v9320_v2  ;;  %v6007_v2 = vpack.c.bf16 %v1960_v1, %v1953_v48  ;;  %v9394_v8 = vand.u32 4294901760, %v8080_v39 }
 0x17c   : > { %5769 = vmatprep.mubr.f32.mxu0 %v8067_v4  ;;  %5397 = vmatprep.mubr.f32.mxu1 %v9321_v56  ;;  %v9352_v56 = vand.u32 4294901760, %v9326_v45  ;;  %v9357_v45 = vand.u32 4294901760, %v9336_v24  ;;  %v9365_v24 = vand.u32 4294901760, %v7972_v50  ;;  %v9395_v4 = vand.u32 4294901760, %v8089_v16 }
 0x17d   : > { %5998 = vmatpush3.bf16.msra.mxu1 %v9345_v30  ;;  %v9362_v30 = vld [vmem:[#allocation14_spill] sm:$0xff] }
 0x17e   : > { %6000 = vmatprep.subr.bf16.mxu1 %v9350_v28 }
 0x17f   : > { %5770 = vmatmul.mubr.f32.gmra.mrb[12].mxu0 %v8080_v39  ;;  %5398 = vmatmul.mubr.f32.gmra.mrb[4].mxu1 %v9323_v18  ;;  %v9354_v18 = vand.u32 4294901760, %v9331_v38  ;;  %v9360_v38 = vld [vmem:[#allocation20_spill] sm:$0xff] }
 0x180   : > { %5772 = vmatprep.mubr.f32.mxu0 %v8089_v16  ;;  %5400 = vmatprep.mubr.f32.mxu1 %v9324_v14  ;;  %v9355_v14 = vld [vmem:[#allocation89_spill] sm:$0xff] }
 0x181   : > { %6002 = vmatpush3.bf16.msra.mxu1 %v9350_v28  ;;  %v9368_v28 = vand.u32 4294901760, %v9367_v41 }
 0x182   : > { %6004 = vmatprep.subr.bf16.mxu1 %v9351_v63 }
 0x183   : > { %5773 = vmatmul.mubr.f32.gmra.mrb[14].mxu0 %v8101_v22  ;;  %5401 = vmatmul.mubr.f32.gmra.mrb[6].mxu1 %v9325_v0  ;;  %v9356_v0 = vand.u32 4294901760, %v9334_v31  ;;  %v9363_v31 = vld [vmem:[#allocation40_spill] sm:$0xff]  ;;  %v1801_v48 = vsub.f32 %v9367_v41, %v9368_v28  ;;  %v9379_v28 = vld [vmem:[#allocation25_spill] sm:$0xff] }
 0x184   : > { %5791 = vmatprep.mubr.f32.mxu0 %v9352_v56  ;;  %5403 = vmatprep.mubr.f32.mxu1 %v9327_v44  ;;  %v9358_v44 = vld [vmem:[#allocation19_spill] sm:$0xff]  ;;  %v9364_v17 = vand.u32 4294901760, %v9363_v31  ;;  %v9369_v56 = vld [vmem:[#allocation21_spill] sm:$0xff] }
 0x185   : > { %6006 = vmatpush3.bf16.msra.mxu1 %v9351_v63  ;;  %v9359_v37 = vand.u32 4294901760, %v9358_v44 }
 0x186   : > { %6008 = vmatprep.subr.bf16.mxu1 %v6007_v2 }
 0x187   : > { %5792 = vmatmul.mubr.f32.vlgmr.msra.gmra.mrb[0].mxu0 %v9353_v19  ;;  %5404 = vmatmul.mubr.f32.gmra.mrb[8].mxu1 %v9330_v62  ;;  %v1966_v62 = vsub.f32 %v9358_v44, %v9359_v37  ;;  %v9370_v19 = vand.u32 4294901760, %v9369_v56 }
 0x188   : > { %5794 = vmatprep.mubr.f32.mxu0 %v9354_v18  ;;  %5406 = vmatprep.mubr.f32.mxu1 %v9332_v20  ;;  %v9361_v20 = vand.u32 4294901760, %v9360_v38  ;;  %v9371_v18 = vld [vmem:[#allocation22_spill] sm:$0xff] }
 0x189   : > { %6154 = vmatpush3.bf16.msra.mxu0 %v9344_v26  ;;  %v1967_v1 = vand.u32 4294901760, %v1966_v62  ;;  %v1980_v50 = vsub.f32 %v9369_v56, %v9370_v19  ;;  %v9376_v62 = vand.u32 4294901760, %v8007_v61  ;;  %v9380_v19 = vand.u32 4294901760, %v9379_v28 }
 0x18a   : > { %6156 = vmatprep.subr.bf16.mxu0 %v9355_v14  ;;  %v1973_v26 = vsub.f32 %v9360_v38, %v9361_v20  ;;  %v1802_v20 = vand.u32 4294901760, %v1801_v48 }
 0x18b   : > { %5795 = vmatmul.mubr.f32.gmra.mrb[2].mxu0 %v9356_v0  ;;  %5407 = vmatmul.mubr.f32.gmra.mrb[10].mxu1 %v9335_v59  ;;  %v1791_v59 = vsub.f32 %v9363_v31, %v9364_v17  ;;  %v9373_v0 = vld [vmem:[#allocation41_spill] sm:$0xff] }
 0x18c   : > { %5797 = vmatprep.mubr.f32.mxu0 %v9357_v45  ;;  %5409 = vmatprep.mubr.f32.mxu1 %v9337_v58  ;;  %v9366_v58 = vand.u32 4294901760, %v9340_v5  ;;  %v1974_v63 = vand.u32 4294901760, %v1973_v26  ;;  %v9374_v45 = vand.u32 4294901760, %v9373_v0  ;;  %v9377_v26 = vld [vmem:[#allocation45_spill] sm:$0xff] }
 0x18d   : > { %6158 = vmatpush3.bf16.msra.mxu0 %v9355_v14  ;;  %v9372_v14 = vand.u32 4294901760, %v9371_v18  ;;  %v1792_v5 = vand.u32 4294901760, %v1791_v59  ;;  %v1981_v59 = vand.u32 4294901760, %v1980_v50 }
 0x18e   : > { %6160 = vmatprep.subr.bf16.mxu0 %v9362_v30  ;;  %v1811_v37 = vsub.f32 %v9373_v0, %v9374_v45 }
 0x18f   : > { %5798 = vmatmul.mubr.f32.gmra.mrb[4].mxu0 %v9365_v24  ;;  %5410 = vmatmul.mubr.f32.gmra.mrb[12].mxu1 %v9339_v57  ;;  %v1987_v57 = vsub.f32 %v9371_v18, %v9372_v14  ;;  %v6011_v24 = vpack.c.bf16 %v1974_v63, %v1967_v1  ;;  %v9381_v14 = vld [vmem:[#allocation26_spill] sm:$0xff] }
 0x190   : > { %5800 = vmatprep.mubr.f32.mxu0 %v9366_v58  ;;  %5412 = vmatprep.mubr.f32.mxu1 %v9341_v7  ;;  %v9375_v7 = vand.u32 4294901760, %v8002_v15  ;;  %v1994_v15 = vsub.f32 %v9379_v28, %v9380_v19  ;;  %v1812_v48 = vand.u32 4294901760, %v1811_v37  ;;  %v9386_v1 = vld [vmem:[#allocation54_spill] sm:$0xff] }
 0x191   : > { %6162 = vmatpush3.bf16.msra.mxu0 %v9362_v30  ;;  %v9378_v30 = vand.u32 4294901760, %v9377_v26  ;;  %v1988_v58 = vand.u32 4294901760, %v1987_v57  ;;  %v9387_v63 = vand.u32 4294901760, %v9386_v1 }
 0x192   : > { %6164 = vmatprep.subr.bf16.mxu0 %v8056_v27 }
 0x193   : > { %5801 = vmatmul.mubr.f32.gmra.mrb[6].mxu0 %v9375_v7  ;;  %5413 = vmatmul.mubr.f32.gmra.mrb[14].mxu1 %v9343_v54  ;;  %v1821_v17 = vsub.f32 %v9377_v26, %v9378_v30  ;;  %v9382_v54 = vand.u32 4294901760, %v9381_v14  ;;  %v1841_v50 = vsub.f32 %v9386_v1, %v9387_v63  ;;  %v6015_v37 = vpack.c.bf16 %v1988_v58, %v1981_v59  ;;  %v9392_v58 = vld [vmem:[#allocation64_spill] sm:$0xff]  ;;  %v9398_v63 = vld [vmem:[#allocation66_spill] sm:$0xff] }
 0x194   : > { %5803 = vmatprep.mubr.f32.mxu0 %v9376_v62  ;;  %5431 = vmatprep.mubr.f32.mxu1 %v1792_v5  ;;  %v9383_v5 = vld [vmem:[#allocation51_spill] sm:$0xff]  ;;  %v1995_v62 = vand.u32 4294901760, %v1994_v15  ;;  %v9393_v15 = vand.u32 4294901760, %v9392_v58 }
 0x195   : > { %6166 = vmatpush3.bf16.msra.mxu0 %v8056_v27  ;;  %v2001_v61 = vsub.f32 %v9381_v14, %v9382_v54  ;;  %v9384_v45 = vand.u32 4294901760, %v9383_v5  ;;  %v9385_v27 = vand.u32 4294901760, %v8039_v34  ;;  %v1822_v57 = vand.u32 4294901760, %v1821_v17  ;;  %v9388_v54 = vld [vmem:[#allocation59_spill] sm:$0xff] }
 0x196   : > { %6168 = vmatprep.subr.bf16.mxu0 %v9316_v32  ;;  %v1842_v34 = vand.u32 4294901760, %v1841_v50  ;;  %v9399_v50 = vand.u32 4294901760, %v9398_v63 }
 0x197   : > { %v1831_v7 = vsub.f32 %v9383_v5, %v9384_v45  ;;  %5804 = vmatmul.mubr.f32.gmra.mrb[8].mxu0 %v3138_v47  ;;  %5432 = vmatmul.mubr.f32.vlgmr.msra.gmra.mrb[0].mxu1 %v1802_v20  ;;  %v2002_v30 = vand.u32 4294901760, %v2001_v61  ;;  %v9389_v45 = vand.u32 4294901760, %v9388_v54  ;;  %v9390_v47 = vld [vmem:[#allocation58_spill] sm:$0xff]  ;;  %v1871_v61 = vsub.f32 %v9392_v58, %v9393_v15 }
 0x198   : > { %5806 = vmatprep.mubr.f32.mxu0 %v9385_v27  ;;  %6010 = vmatpush3.bf16.msra.mxu1 %v6007_v2  ;;  %v9391_v2 = vand.u32 4294901760, %v9390_v47  ;;  %v1891_v39 = vsub.f32 %v9398_v63, %v9399_v50  ;;  %v6031_v50 = vpack.c.bf16 %v9371_v18, %v9369_v56  ;;  %v9417_v56 = vld [vmem:[#allocation55_spill] sm:$0xff]  ;;  %v9418_v18 = vld [vmem:[#allocation50_spill] sm:$0xff] }
 0x199   : > { %5434 = vmatprep.mubr.f32.mxu1 %v1812_v48  ;;  %6012 = vmatprep.subr.bf16.mxu1 %v6011_v24  ;;  %v1832_v19 = vand.u32 4294901760, %v1831_v7  ;;  %v1851_v49 = vsub.f32 %v9388_v54, %v9389_v45  ;;  %v6019_v17 = vpack.c.bf16 %v2002_v30, %v1995_v62  ;;  %v6023_v7 = vpack.c.bf16 %v9348_v11, %v9346_v3  ;;  %v9403_v3 = vld [vmem:[#allocation80_spill] sm:$0xff] }
 0x19a   : > { %v1861_v20 = vsub.f32 %v9390_v47, %v9391_v2  ;;  %v1872_v27 = vand.u32 4294901760, %v1871_v61  ;;  %v1892_v11 = vand.u32 4294901760, %v1891_v39  ;;  %v9409_v61 = vld [vmem:[#allocation105_spill] sm:$0xff]  ;;  %v9414_v39 = vld [vmem:[#allocation39_spill] sm:$0xff] }
 0x19b   : > { %5807 = vmatmul.mubr.f32.gmra.mrb[10].mxu0 %v3158_v6  ;;  %5435 = vmatmul.mubr.f32.gmra.mrb[2].mxu1 %v1822_v57  ;;  %v1852_v59 = vand.u32 4294901760, %v1851_v49  ;;  %v9400_v57 = vand.u32 4294901760, %v8101_v22  ;;  %v9405_v49 = vld [vmem:[#allocation101_spill] sm:$0xff] }
 0x19c   : > { %5809 = vmatprep.mubr.f32.mxu0 %v3168_v52  ;;  %5437 = vmatprep.mubr.f32.mxu1 %v1832_v19  ;;  %v1862_v6 = vand.u32 4294901760, %v1861_v20  ;;  %v9396_v52 = vld [vmem:[#allocation76_spill] sm:$0xff]  ;;  %v9404_v19 = vand.u32 4294901760, %v9403_v3 }
 0x19d   : > { %6014 = vmatpush3.bf16.msra.mxu1 %v6011_v24  ;;  %v9397_v24 = vand.u32 4294901760, %v9396_v52 }
 0x19e   : > { %6016 = vmatprep.subr.bf16.mxu1 %v6015_v37  ;;  %v1911_v45 = vsub.f32 %v9403_v3, %v9404_v19 }
 0x19f   : > { %5810 = vmatmul.mubr.f32.gmra.mrb[12].mxu0 %v9394_v8  ;;  %5438 = vmatmul.mubr.f32.gmra.mrb[4].mxu1 %v1842_v34  ;;  %v1881_v48 = vsub.f32 %v9396_v52, %v9397_v24  ;;  %v9406_v34 = vand.u32 4294901760, %v9405_v49  ;;  %v9410_v8 = vand.u32 4294901760, %v9409_v61 }
 0x1a0   : > { %5812 = vmatprep.mubr.f32.mxu0 %v9395_v4  ;;  %5440 = vmatprep.mubr.f32.mxu1 %v1852_v59  ;;  %v1912_v20 = vand.u32 4294901760, %v1911_v45 }
 0x1a1   : > { %6018 = vmatpush3.bf16.msra.mxu1 %v6015_v37  ;;  %v1882_v16 = vand.u32 4294901760, %v1881_v48  ;;  %v9401_v37 = vld [vmem:[#allocation93_spill] sm:$0xff]  ;;  %v1921_v2 = vsub.f32 %v9405_v49, %v9406_v34  ;;  %v1941_v4 = vsub.f32 %v9409_v61, %v9410_v8  ;;  %v6027_v48 = vpack.c.bf16 %v9360_v38, %v9358_v44 }
 0x1a2   : > { %6020 = vmatprep.subr.bf16.mxu1 %v6019_v17  ;;  %v9402_v62 = vand.u32 4294901760, %v9401_v37  ;;  %v6035_v44 = vpack.c.bf16 %v9381_v14, %v9379_v28  ;;  %v9416_v38 = vld [vmem:[#allocation49_spill] sm:$0xff]  ;;  %v9420_v28 = vld [vmem:[#allocation67_spill] sm:$0xff] }
 0x1a3   : > { %5813 = vmatmul.mubr.f32.gmra.mrb[14].mxu0 %v9400_v57  ;;  %5441 = vmatmul.mubr.f32.gmra.mrb[6].mxu1 %v1862_v6  ;;  %v1942_v24 = vand.u32 4294901760, %v1941_v4  ;;  %v9421_v14 = vld [vmem:[#allocation63_spill] sm:$0xff]  ;;  %v9422_v57 = vld [vmem:[#allocation85_spill] sm:$0xff] }
 0x1a4   : > { %5831 = vmatprep.mubr.f32.mxu0 %v7841_v13  ;;  %5443 = vmatprep.mubr.f32.mxu1 %v1872_v27  ;;  %v1901_v30 = vsub.f32 %v9401_v37, %v9402_v62  ;;  %v9412_v27 = vld [vmem:[#allocation35_spill] sm:$0xff] }
 0x1a5   : > { %6022 = vmatpush3.bf16.msra.mxu1 %v6019_v17  ;;  %v9407_v17 = vld [vmem:[#allocation95_spill] sm:$0xff] }
 0x1a6   : > { %6024 = vmatprep.subr.bf16.mxu1 %v6023_v7  ;;  %v1902_v22 = vand.u32 4294901760, %v1901_v30  ;;  %v9408_v59 = vand.u32 4294901760, %v9407_v17 }
 0x1a7   : > { %5832 = vmatmul.mubr.f32.vlgmr.msra.gmra.mrb[0].mxu0 %v7820_v12  ;;  %5444 = vmatmul.mubr.f32.gmra.mrb[8].mxu1 %v1882_v16  ;;  %v9423_v16 = vld [vmem:[#allocation79_spill] sm:$0xff] }
 0x1a8   : > { %5834 = vmatprep.mubr.f32.mxu0 %v7853_v35  ;;  %5446 = vmatprep.mubr.f32.mxu1 %v1892_v11  ;;  %v1931_v15 = vsub.f32 %v9407_v17, %v9408_v59 }
 0x1a9   : > { %6170 = vmatpush3.bf16.msra.mxu0 %v9316_v32  ;;  %v1922_v32 = vand.u32 4294901760, %v1921_v2 }
 0x1aa   : > { %6172 = vmatprep.subr.bf16.mxu0 %v9333_v25  ;;  %v1932_v6 = vand.u32 4294901760, %v1931_v15 }
 0x1ab   : > { %5835 = vmatmul.mubr.f32.gmra.mrb[2].mxu0 %v9304_v46  ;;  %5447 = vmatmul.mubr.f32.gmra.mrb[10].mxu1 %v1902_v22 }
 0x1ac   : > { %5837 = vmatprep.mubr.f32.mxu0 %v9306_v43  ;;  %5449 = vmatprep.mubr.f32.mxu1 %v1912_v20 }
 0x1ad   : > { %6174 = vmatpush3.bf16.msra.mxu0 %v9333_v25  ;;  %v9411_v25 = vld [vmem:[#allocation31_spill] sm:$0xff] }
 0x1ae   : > { %6176 = vmatprep.subr.bf16.mxu0 %v9338_v60 }
 0x1af   : > { %5838 = vmatmul.mubr.f32.gmra.mrb[4].mxu0 %v9308_v51  ;;  %5450 = vmatmul.mubr.f32.gmra.mrb[12].mxu1 %v1922_v32 }
 0x1b0   : > { %5840 = vmatprep.mubr.f32.mxu0 %v9310_v23  ;;  %5452 = vmatprep.mubr.f32.mxu1 %v1932_v6 }
 0x1b1   : > { %6178 = vmatpush3.bf16.msra.mxu0 %v9338_v60  ;;  %v9413_v60 = vld [vmem:[#allocation34_spill] sm:$0xff] }
 0x1b2   : > { %6180 = vmatprep.subr.bf16.mxu0 %v9342_v10 }
 0x1b3   : > { %5841 = vmatmul.mubr.f32.gmra.mrb[6].mxu0 %v9312_v29  ;;  %5453 = vmatmul.mubr.f32.gmra.mrb[14].mxu1 %v1942_v24 }
 0x1b4   : > { %5843 = vmatprep.mubr.f32.mxu0 %v9314_v53  ;;  %5471 = vmatprep.mubr.f32.mxu1 %v9411_v25 }
 0x1b5   : > { %6182 = vmatpush3.bf16.msra.mxu0 %v9342_v10  ;;  %v9415_v10 = vld [vmem:[#allocation46_spill] sm:$0xff] }
 0x1b7   : > { %5844 = vmatmul.mubr.f32.gmra.mrb[8].mxu0 %v8009_v21  ;;  %5472 = vmatmul.mubr.f32.vlgmr.msra.gmra.mrb[0].mxu1 %v9412_v27 }
 0x1b8   : > { %5846 = vmatprep.mubr.f32.mxu0 %v8011_v33  ;;  %6026 = vmatpush3.bf16.msra.mxu1 %v6023_v7  ;;  %v9419_v7 = vld [vmem:[#allocation60_spill] sm:$0xff] }
 0x1b9   : > { %5474 = vmatprep.mubr.f32.mxu1 %v9413_v60  ;;  %6028 = vmatprep.subr.bf16.mxu1 %v6027_v48 }
 0x1bb   : > { %5847 = vmatmul.mubr.f32.gmra.mrb[10].mxu0 %v8041_v9  ;;  %5475 = vmatmul.mubr.f32.gmra.mrb[2].mxu1 %v9414_v39 }
 0x1bc   : > { %5849 = vmatprep.mubr.f32.mxu0 %v8043_v55  ;;  %5477 = vmatprep.mubr.f32.mxu1 %v9415_v10 }
 0x1bd   : > { %6030 = vmatpush3.bf16.msra.mxu1 %v6027_v48 }
 0x1be   : > { %6032 = vmatprep.subr.bf16.mxu1 %v6031_v50 }
 0x1bf   : > { %5850 = vmatmul.mubr.f32.gmra.mrb[12].mxu0 %v8064_v36  ;;  %5478 = vmatmul.mubr.f32.gmra.mrb[4].mxu1 %v9416_v38 }
 0x1c0   : > { %5852 = vmatprep.mubr.f32.mxu0 %v8069_v42  ;;  %5480 = vmatprep.mubr.f32.mxu1 %v9417_v56 }
 0x1c1   : > { %6034 = vmatpush3.bf16.msra.mxu1 %v6031_v50 }
 0x1c2   : > { %6036 = vmatprep.subr.bf16.mxu1 %v6035_v44 }
 0x1c3   : > { %5853 = vmatmul.mubr.f32.gmra.mrb[14].mxu0 %v8082_v40  ;;  %5481 = vmatmul.mubr.f32.gmra.mrb[6].mxu1 %v9418_v18 }
 0x1c4   : > { %5871 = vmatprep.mubr.f32.mxu0 %v7841_v13  ;;  %5483 = vmatprep.mubr.f32.mxu1 %v9419_v7  ;;  %v9424_v13 = vld [vmem:[#allocation96_spill] sm:$0xff] }
 0x1c5   : > { %6038 = vmatpush3.bf16.msra.mxu1 %v6035_v44 }
 0x1c7   : > { %5872 = vmatmul.mubr.f32.vlgmr.msra.gmra.mrb[0].mxu0 %v7820_v12  ;;  %5484 = vmatmul.mubr.f32.gmra.mrb[8].mxu1 %v9420_v28  ;;  %v9425_v12 = vld [vmem:[#allocation90_spill] sm:$0xff] }
 0x1c8   : > { %5874 = vmatprep.mubr.f32.mxu0 %v7853_v35  ;;  %5486 = vmatprep.mubr.f32.mxu1 %v9421_v14  ;;  %v9426_v35 = vld [vmem:[#allocation104_spill] sm:$0xff] }
 0x1cb   : > { %5875 = vmatmul.mubr.f32.gmra.mrb[2].mxu0 %v9304_v46  ;;  %5487 = vmatmul.mubr.f32.gmra.mrb[10].mxu1 %v9422_v57 }
 0x1cc   : > { %5877 = vmatprep.mubr.f32.mxu0 %v9306_v43  ;;  %5489 = vmatprep.mubr.f32.mxu1 %v9423_v16 }
 0x1cf   : > { %5878 = vmatmul.mubr.f32.gmra.mrb[4].mxu0 %v9308_v51  ;;  %5490 = vmatmul.mubr.f32.gmra.mrb[12].mxu1 %v9424_v13 }
 0x1d0   : > { %5880 = vmatprep.mubr.f32.mxu0 %v9310_v23  ;;  %5492 = vmatprep.mubr.f32.mxu1 %v9425_v12  ;;  %v8449_v23 = vld [vmem:[%s8861_s3] ss:$0 sm:$0xff] }
 0x1d3   : > { %5881 = vmatmul.mubr.f32.gmra.mrb[6].mxu0 %v9312_v29  ;;  %5493 = vmatmul.mubr.f32.gmra.mrb[14].mxu1 %v9426_v35 }
 0x1d4   : > { %5883 = vmatprep.mubr.f32.mxu0 %v9314_v53  ;;  %5511 = vmatprep.mubr.f32.mxu1 %v9363_v31 }
 0x1d7   : > { %5884 = vmatmul.mubr.f32.gmra.mrb[8].mxu0 %v8009_v21  ;;  %5512 = vmatmul.mubr.f32.vlgmr.msra.gmra.mrb[0].mxu1 %v9367_v41 }
 0x1d8   : > { %5886 = vmatprep.mubr.f32.mxu0 %v8011_v33  ;;  %5514 = vmatprep.mubr.f32.mxu1 %v9373_v0 }
 0x1db   : > { %5887 = vmatmul.mubr.f32.gmra.mrb[10].mxu0 %v8041_v9  ;;  %5515 = vmatmul.mubr.f32.gmra.mrb[2].mxu1 %v9377_v26 }
 0x1dc   : > { %5889 = vmatprep.mubr.f32.mxu0 %v8043_v55  ;;  %5517 = vmatprep.mubr.f32.mxu1 %v9383_v5 }
 0x1df   : > { %5890 = vmatmul.mubr.f32.gmra.mrb[12].mxu0 %v8064_v36  ;;  %5518 = vmatmul.mubr.f32.gmra.mrb[4].mxu1 %v9386_v1 }
 0x1e0   : > { %5892 = vmatprep.mubr.f32.mxu0 %v8069_v42  ;;  %5520 = vmatprep.mubr.f32.mxu1 %v9388_v54 }
 0x1e3   : > { %5893 = vmatmul.mubr.f32.gmra.mrb[14].mxu0 %v8082_v40  ;;  %5521 = vmatmul.mubr.f32.gmra.mrb[6].mxu1 %v9390_v47 }
 0x1e4   : > { %5523 = vmatprep.mubr.f32.mxu1 %v9392_v58 }
 0x1e7   : > { %5524 = vmatmul.mubr.f32.gmra.mrb[8].mxu1 %v9396_v52 }
 0x1e8   : > { %5526 = vmatprep.mubr.f32.mxu1 %v9398_v63 }
 0x1eb   : > { %5527 = vmatmul.mubr.f32.gmra.mrb[10].mxu1 %v9401_v37 }
 0x1ec   : > { %5529 = vmatprep.mubr.f32.mxu1 %v9403_v3 }
 0x1ef   : > { %5530 = vmatmul.mubr.f32.gmra.mrb[12].mxu1 %v9405_v49 }
 0x1f0   : > { %5532 = vmatprep.mubr.f32.mxu1 %v9407_v17 }
 0x1f3   : > { %5533 = vmatmul.mubr.f32.gmra.mrb[14].mxu1 %v9409_v61 }
 0x29a   : > { %v5873_v21 = vpop.f32.mrb[0].mxu0 }
 0x29b   : > { %v4061_v33 = vpop.f32.mrb[1].mxu0 }
 0x29e   : > { %v5876_v9 = vpop.f32.mrb[2].mxu0 }
 0x29f   : > { %v4073_v55 = vpop.f32.mrb[3].mxu0 }
 0x2a2   : > { %v5879_v36 = vpop.f32.mrb[4].mxu0 }
 0x2a3   : > { %v4085_v42 = vpop.f32.mrb[5].mxu0 }
 0x2a6   : > { %v5882_v40 = vpop.f32.mrb[6].mxu0 }
 0x2a7   : > { %v4097_v46 = vpop.f32.mrb[7].mxu0 }
 0x2aa   : > { %v5885_v43 = vpop.f32.mrb[8].mxu0  ;;  %v5513_v51 = vpop.f32.mrb[0].mxu1 }
 0x2ab   : > { %v4109_v29 = vpop.f32.mrb[9].mxu0  ;;  %v6183_v53 = vadd.f32 %v5873_v21, %v5513_v51  ;;  %v2233_v31 = vpop.f32.mrb[1].mxu1 }
 0x2ac   : > { %v6184_v41 = vadd.f32 %v4061_v33, %v2233_v31 }
 0x2ad   : > { %v8452_v0 = vadd.f32 %v6183_v53, %v8449_v23 }
 0x2ae   : > { %v5888_v26 = vpop.f32.mrb[10].mxu0  ;;  %v8455_v5 = vadd.f32 %v6184_v41, %v8449_v23  ;;  %v5516_v1 = vpop.f32.mrb[2].mxu1 }
 0x2af   : > { %v4121_v54 = vpop.f32.mrb[11].mxu0  ;;  %v6185_v47 = vadd.f32 %v5876_v9, %v5516_v1  ;;  %v2247_v58 = vpop.f32.mrb[3].mxu1  ;;  %v4195_v52 = vmul.f32 %v8452_v0, %v8452_v0 }
 0x2b0   : > { %v6186_v63 = vadd.f32 %v4073_v55, %v2247_v58  ;;  %v4194_v37 = vmul.f32 %v8455_v5, %v8455_v5 }
 0x2b1   : > { %v8462_v62 = vadd.f32 %v6185_v47, %v8449_v23  ;;  %4212 = vadd.xlane.f32.xlu1 %v4195_v52 }
 0x2b2   : > { %v5891_v30 = vpop.f32.mrb[12].mxu0  ;;  %4210 = vadd.xlane.f32.xlu0 %v4194_v37  ;;  %v5519_v11 = vpop.f32.mrb[4].mxu1  ;;  %v8467_v49 = vadd.f32 %v6186_v63, %v8449_v23 }
 0x2b3   : > { %v4133_v3 = vpop.f32.mrb[13].mxu0  ;;  %v6187_v19 = vadd.f32 %v5879_v36, %v5519_v11  ;;  %v2261_v45 = vpop.f32.mrb[5].mxu1  ;;  %v4197_v22 = vmul.f32 %v8462_v62, %v8462_v62 }
 0x2b4   : > { %v6188_v34 = vadd.f32 %v4085_v42, %v2261_v45  ;;  %v4196_v4 = vmul.f32 %v8467_v49, %v8467_v49 }
 0x2b5   : > { %v8473_v61 = vadd.f32 %v6187_v19, %v8449_v23 }
 0x2b6   : > { %v5894_v2 = vpop.f32.mrb[14].mxu0  ;;  %v8470_v20 = vadd.f32 %v6188_v34, %v8449_v23  ;;  %4216 = vadd.xlane.f32.xlu0 %v4197_v22  ;;  %v5522_v17 = vpop.f32.mrb[6].mxu1 }
 0x2b7   : > { %v4145_v59 = vpop.f32.mrb[15].mxu0  ;;  %v6189_v15 = vadd.f32 %v5882_v40, %v5522_v17  ;;  %v2275_v32 = vpop.f32.mrb[7].mxu1  ;;  %v4199_v39 = vmul.f32 %v8473_v61, %v8473_v61 }
 0x2b8   : > { %v6190_v8 = vadd.f32 %v4097_v46, %v2275_v32  ;;  %v4198_v6 = vmul.f32 %v8470_v20, %v8470_v20 }
 0x2b9   : > { %v8483_v60 = vadd.f32 %v6189_v15, %v8449_v23 }
 0x2ba   : > { %v8480_v24 = vadd.f32 %v6190_v8, %v8449_v23  ;;  %4214 = vadd.xlane.f32.xlu0 %v4196_v4  ;;  %4218 = vadd.xlane.f32.xlu1 %v4198_v6  ;;  %v5525_v25 = vpop.f32.mrb[8].mxu1 }
 0x2bb   : > { %v6191_v48 = vadd.f32 %v5885_v43, %v5525_v25  ;;  %v2289_v27 = vpop.f32.mrb[9].mxu1  ;;  %v4201_v14 = vmul.f32 %v8483_v60, %v8483_v60 }
 0x2bc   : > { %v6192_v50 = vadd.f32 %v4109_v29, %v2289_v27  ;;  %v4200_v10 = vmul.f32 %v8480_v24, %v8480_v24 }
 0x2bd   : > { %v8493_v7 = vadd.f32 %v6191_v48, %v8449_v23 }
 0x2be   : > { %v8490_v44 = vadd.f32 %v6192_v50, %v8449_v23  ;;  %4220 = vadd.xlane.f32.xlu0 %v4199_v39  ;;  %4222 = vadd.xlane.f32.xlu1 %v4200_v10  ;;  %v5528_v38 = vpop.f32.mrb[10].mxu1 }
 0x2bf   : > { %v6193_v56 = vadd.f32 %v5888_v26, %v5528_v38  ;;  %v2303_v18 = vpop.f32.mrb[11].mxu1  ;;  %v4203_v9 = vmul.f32 %v8493_v7, %v8493_v7 }
 0x2c0   : > { %v6194_v28 = vadd.f32 %v4121_v54, %v2303_v18  ;;  %v4202_v57 = vmul.f32 %v8490_v44, %v8490_v44 }
 0x2c1   : > { %v8503_v21 = vadd.f32 %v6193_v56, %v8449_v23 }
 0x2c2   : > { %v8500_v16 = vadd.f32 %v6194_v28, %v8449_v23  ;;  %4224 = vadd.xlane.f32.xlu0 %v4201_v14  ;;  %4226 = vadd.xlane.f32.xlu1 %v4202_v57  ;;  %v5531_v13 = vpop.f32.mrb[12].mxu1 }
 0x2c3   : > { %v6195_v12 = vadd.f32 %v5891_v30, %v5531_v13  ;;  %v2317_v35 = vpop.f32.mrb[13].mxu1  ;;  %v4205_v29 = vmul.f32 %v8503_v21, %v8503_v21 }
 0x2c4   : > { %v6196_v33 = vadd.f32 %v4133_v3, %v2317_v35  ;;  %v4204_v55 = vmul.f32 %v8500_v16, %v8500_v16 }
 0x2c5   : > { %v8513_v43 = vadd.f32 %v6195_v12, %v8449_v23 }
 0x2c6   : > { %v8510_v36 = vadd.f32 %v6196_v33, %v8449_v23  ;;  %4228 = vadd.xlane.f32.xlu0 %v4203_v9  ;;  %4230 = vadd.xlane.f32.xlu1 %v4204_v55  ;;  %v5534_v42 = vpop.f32.mrb[14].mxu1 }
 0x2c7   : > { %v6197_v40 = vadd.f32 %v5894_v2, %v5534_v42  ;;  %v2331_v46 = vpop.f32.mrb[15].mxu1  ;;  %v4207_v26 = vmul.f32 %v8513_v43, %v8513_v43 }
 0x2c8   : > { %v6198_v51 = vadd.f32 %v4145_v59, %v2331_v46  ;;  %v4206_v53 = vmul.f32 %v8510_v36, %v8510_v36 }
 0x2c9   : > { %v8523_v41 = vadd.f32 %v6197_v40, %v8449_v23 }
 0x2ca   : > { %v8520_v31 = vadd.f32 %v6198_v51, %v8449_v23  ;;  %4232 = vadd.xlane.f32.xlu0 %v4205_v29  ;;  %4234 = vadd.xlane.f32.xlu1 %v4206_v53 }
 0x2cb   : > { %v4209_v54 = vmul.f32 %v8523_v41, %v8523_v41 }
 0x2cc   : > { %v4208_v1 = vmul.f32 %v8520_v31, %v8520_v31 }
 0x2ce   : > { %4236 = vadd.xlane.f32.xlu0 %v4207_v26  ;;  %4238 = vadd.xlane.f32.xlu1 %v4208_v1 }
 0x2d2   : > { %4240 = vadd.xlane.f32.xlu0 %v4209_v54 }
 0x33e   : > { %v4213_v47 = vpop.xlane.xlu1 %4212 }
 0x33f   : > { %6500 = vrsqrt.f32 %v4213_v47  ;;  %v4211_v58 = vpop.xlane.xlu0 %4210  ;;  %vm4251_vm3 = vcmp.eq.f32.partialorder %v4213_v47, inf  ;;  %vm4253_vm4 = vcmp.eq.f32.partialorder %v4213_v47, 0.0  ;;  %v4254_v3 = vand.u32 2147483648, %v4213_v47 }
 0x340   : > { %6502 = vrsqrt.f32 %v4211_v58  ;;  %vm4244_vm5 = vcmp.eq.f32.partialorder %v4211_v58, inf  ;;  %v4247_v2 = vand.u32 2147483648, %v4211_v58  ;;  %vm4246_vm6 = vcmp.eq.f32.partialorder %v4211_v58, 0.0 }
 0x343   : > { %v4217_v52 = vpop.xlane.xlu0 %4216 }
 0x344   : > { %6504 = vrsqrt.f32 %v4217_v52  ;;  %vm4265_vm7 = vcmp.eq.f32.partialorder %v4217_v52, inf  ;;  %vm4267_vm8 = vcmp.eq.f32.partialorder %v4217_v52, 0.0  ;;  %v4268_v25 = vand.u32 2147483648, %v4217_v52 }
 0x347   : > { %v4215_v23 = vpop.xlane.xlu0 %4214  ;;  %v8531_v63 = vpop.xlane.xlu1 %4218 }
 0x348   : > { %6506 = vrsqrt.f32 %v4215_v23  ;;  %vm4258_vm9 = vcmp.eq.f32.partialorder %v4215_v23, inf  ;;  %vm4260_vm10 = vcmp.eq.f32.partialorder %v4215_v23, 0.0  ;;  %v4261_v50 = vand.u32 2147483648, %v4215_v23 }
 0x349   : > { %v6501_v37 = vpop.eup %6500  ;;  %6508 = vrsqrt.f32 %v8531_v63  ;;  %vm4272_vm11 = vcmp.eq.f32.partialorder %v8531_v63, inf  ;;  %vm4274_vm12 = vcmp.eq.f32.partialorder %v8531_v63, 0.0  ;;  %v4275_v56 = vand.u32 2147483648, %v8531_v63 }
 0x34a   : > { %v6503_v30 = vpop.eup %6502  ;;  %v4250_v11 = vmul.f32 %v6501_v37, %v4213_v47  ;;  %v8590_v37 = vld [vmem:[%s8862_s4] ss:$0 sm:$0xff] }
 0x34b   : > { %v4243_v19 = vmul.f32 %v6503_v30, %v4211_v58  ;;  %v8534_v45 = vpop.xlane.xlu0 %4220  ;;  %v8536_v22 = vpop.xlane.xlu1 %4222 }
 0x34c   : > { %v4252_v34 = vsel %vm4251_vm3, %v4213_v47, %v4250_v11  ;;  %6510 = vrsqrt.f32 %v8534_v45  ;;  %vm4279_vm13 = vcmp.eq.f32.partialorder %v8534_v45, inf  ;;  %vm4281_vm14 = vcmp.eq.f32.partialorder %v8534_v45, 0.0 }
 0x34d   : > { %v4255_v17 = vsel %vm4253_vm4, %v4254_v3, %v4252_v34  ;;  %v4245_v59 = vsel %vm4244_vm5, %v4211_v58, %v4243_v19  ;;  %6512 = vrsqrt.f32 %v8536_v22  ;;  %v4282_v35 = vand.u32 2147483648, %v8534_v45 }
 0x34e   : > { %v6505_v15 = vpop.eup %6504  ;;  %v4355_v32 = vmax.f32 %v4255_v17, 1e-12  ;;  %v4248_v8 = vsel %vm4246_vm6, %v4247_v2, %v4245_v59  ;;  %vm4286_vm15 = vcmp.eq.f32.partialorder %v8536_v22, inf  ;;  %vm4288_vm0 = vcmp.eq.f32.partialorder %v8536_v22, 0.0 }
 0x34f   : > { %v4354_v4 = vmax.f32 %v4248_v8, 1e-12  ;;  %v4264_v6 = vmul.f32 %v6505_v15, %v4217_v52  ;;  %v8540_v48 = vpop.xlane.xlu0 %4224  ;;  %v8542_v27 = vpop.xlane.xlu1 %4226  ;;  %v4289_v9 = vand.u32 2147483648, %v8536_v22 }
 0x350   : > { %6514 = vrcp.f32 %v4355_v32  ;;  %vm4293_vm2 = vcmp.eq.f32.partialorder %v8540_v48, inf  ;;  %v4296_v46 = vand.u32 2147483648, %v8540_v48  ;;  %vm4295_vm3 = vcmp.eq.f32.partialorder %v8540_v48, 0.0 }
 0x351   : > { %6516 = vrcp.f32 %v4354_v4  ;;  %v4266_v39 = vsel %vm4265_vm7, %v4217_v52, %v4264_v6  ;;  %vm4300_vm4 = vcmp.eq.f32.partialorder %v8542_v27, inf  ;;  %vm4302_vm5 = vcmp.eq.f32.partialorder %v8542_v27, 0.0 }
 0x352   : > { %v6507_v10 = vpop.eup %6506  ;;  %v4269_v38 = vsel %vm4267_vm8, %v4268_v25, %v4266_v39  ;;  %6518 = vrsqrt.f32 %v8540_v48  ;;  %v4303_v58 = vand.u32 2147483648, %v8542_v27 }
 0x353   : > { %v6509_v18 = vpop.eup %6508  ;;  %v4357_v28 = vmax.f32 %v4269_v38, 1e-12  ;;  %v4257_v14 = vmul.f32 %v6507_v10, %v4215_v23  ;;  %6520 = vrsqrt.f32 %v8542_v27  ;;  %v8551_v57 = vpop.xlane.xlu0 %4228 }
 0x354   : > { %v8553_v13 = vpop.xlane.xlu1 %4230  ;;  %v4271_v12 = vmul.f32 %v6509_v18, %v8531_v63  ;;  %6522 = vrsqrt.f32 %v8551_v57  ;;  %vm4307_vm6 = vcmp.eq.f32.partialorder %v8551_v57, inf  ;;  %vm4309_vm7 = vcmp.eq.f32.partialorder %v8551_v57, 0.0 }
 0x355   : > { %6524 = vrcp.f32 %v4357_v28  ;;  %v4259_v33 = vsel %vm4258_vm9, %v4215_v23, %v4257_v14  ;;  %v4310_v3 = vand.u32 2147483648, %v8551_v57  ;;  %v4317_v59 = vand.u32 2147483648, %v8553_v13 }
 0x356   : > { %v6511_v55 = vpop.eup %6510  ;;  %v4262_v42 = vsel %vm4260_vm10, %v4261_v50, %v4259_v33  ;;  %v4273_v40 = vsel %vm4272_vm11, %v8531_v63, %v4271_v12  ;;  %6526 = vrsqrt.f32 %v8553_v13  ;;  %vm4314_vm8 = vcmp.eq.f32.partialorder %v8553_v13, inf }
 0x357   : > { %v6513_v51 = vpop.eup %6512  ;;  %v4356_v29 = vmax.f32 %v4262_v42, 1e-12  ;;  %v4276_v53 = vsel %vm4274_vm12, %v4275_v56, %v4273_v40  ;;  %v4278_v26 = vmul.f32 %v6511_v55, %v8534_v45  ;;  %v8574_v1 = vpop.xlane.xlu0 %4232  ;;  %vm4316_vm10 = vcmp.eq.f32.partialorder %v8553_v13, 0.0 }
 0x358   : > { %v4358_v54 = vmax.f32 %v4276_v53, 1e-12  ;;  %v4285_v47 = vmul.f32 %v6513_v51, %v8536_v22  ;;  %6528 = vrsqrt.f32 %v8574_v1  ;;  %v8585_v23 = vpop.xlane.xlu1 %4234  ;;  %vm4321_vm9 = vcmp.eq.f32.partialorder %v8574_v1, inf }
 0x359   : > { %6530 = vrcp.f32 %v4356_v29  ;;  %v4280_v52 = vsel %vm4279_vm13, %v8534_v45, %v4278_v26  ;;  %vm4323_vm11 = vcmp.eq.f32.partialorder %v8574_v1, 0.0  ;;  %v4331_v39 = vand.u32 2147483648, %v8585_v23 }
 0x35a   : > { %v6515_v63 = vpop.eup %6514  ;;  %6532 = vrcp.f32 %v4358_v54  ;;  %v4283_v30 = vsel %vm4281_vm14, %v4282_v35, %v4280_v52  ;;  %v4287_v11 = vsel %vm4286_vm15, %v8536_v22, %v4285_v47  ;;  %vm4328_vm12 = vcmp.eq.f32.partialorder %v8585_v23, inf }
 0x35b   : > { %v6517_v19 = vpop.eup %6516  ;;  %v4373_v34 = vmul.f32 %v6515_v63, %v8452_v0  ;;  %v4359_v2 = vmax.f32 %v4283_v30, 1e-12  ;;  %v4290_v17 = vsel %vm4288_vm0, %v4289_v9, %v4287_v11  ;;  %6534 = vrsqrt.f32 %v8585_v23  ;;  %v8606_v8 = vpop.xlane.xlu0 %4236 }
 0x35c   : > { %v6519_v15 = vpop.eup %6518  ;;  %v4371_v32 = vmul.f32 %v6517_v19, %v8455_v5  ;;  %v4360_v45 = vmax.f32 %v4290_v17, 1e-12  ;;  %v4324_v5 = vand.u32 2147483648, %v8574_v1  ;;  %vm4330_vm13 = vcmp.eq.f32.partialorder %v8585_v23, 0.0 }
 0x35d   : > { %v6521_v4 = vpop.eup %6520  ;;  %v8609_v0 = vmul.f32 %v8590_v37, %v4373_v34  ;;  %6536 = vrcp.f32 %v4359_v2  ;;  %v4292_v22 = vmul.f32 %v6519_v15, %v8540_v48  ;;  %vm4335_vm14 = vcmp.eq.f32.partialorder %v8606_v8, inf }
 0x35e   : > { %v6523_v6 = vpop.eup %6522  ;;  %v8615_v25 = vmul.f32 %v8590_v37, %v4371_v32  ;;  %6538 = vrcp.f32 %v4360_v45  ;;  %v4299_v50 = vmul.f32 %v6521_v4, %v8542_v27  ;;  %vm4337_vm15 = vcmp.eq.f32.partialorder %v8606_v8, 0.0 }
 0x35f   : > { %v6525_v10 = vpop.eup %6524  ;;  %v4426_v38 = vsub.f32 0.0, %v8609_v0  ;;  %v4294_v56 = vsel %vm4293_vm2, %v8540_v48, %v4292_v22  ;;  %v4306_v18 = vmul.f32 %v6523_v6, %v8551_v57  ;;  %6540 = vrsqrt.f32 %v8606_v8  ;;  %v8671_v6 = vpop.xlane.xlu1 %4238 }
 0x360   : > { %v6527_v28 = vpop.eup %6526  ;;  %v4425_v14 = vsub.f32 0.0, %v8615_v25  ;;  %v4377_v12 = vmul.f32 %v6525_v10, %v8462_v62  ;;  %v4297_v35 = vsel %vm4295_vm3, %v4296_v46, %v4294_v56  ;;  %v4301_v33 = vsel %vm4300_vm4, %v8542_v27, %v4299_v50 }
 0x361   : > { %v4443_v9 = vmul.f32 1.442695, %v4426_v38  ;;  %v4361_v55 = vmax.f32 %v4297_v35, 1e-12  ;;  %v4304_v42 = vsel %vm4302_vm5, %v4303_v58, %v4301_v33  ;;  %v4308_v40 = vsel %vm4307_vm6, %v8551_v57, %v4306_v18 }
 0x362   : > { %v6529_v51 = vpop.eup %6528  ;;  %v4441_v29 = vmul.f32 1.442695, %v4425_v14  ;;  %v8639_v62 = vmul.f32 %v8590_v37, %v4377_v12  ;;  %v4362_v48 = vmax.f32 %v4304_v42, 1e-12  ;;  %v4311_v46 = vsel %vm4309_vm7, %v4310_v3, %v4308_v40 }
 0x363   : > { %v6531_v53 = vpop.eup %6530  ;;  %6542 = vpow2.f32 %v4443_v9  ;;  %v4363_v26 = vmax.f32 %v4311_v46, 1e-12  ;;  %v4313_v27 = vmul.f32 %v6527_v28, %v8553_v13  ;;  %v4320_v54 = vmul.f32 %v6529_v51, %v8574_v1 }
 0x364   : > { %v6533_v47 = vpop.eup %6532  ;;  %6544 = vpow2.f32 %v4441_v29  ;;  %v4428_v58 = vsub.f32 0.0, %v8639_v62  ;;  %v4375_v57 = vmul.f32 %v6531_v53, %v8467_v49  ;;  %v4338_v52 = vand.u32 2147483648, %v8606_v8 }
 0x365   : > { %v4379_v63 = vmul.f32 %v6533_v47, %v8470_v20  ;;  %6546 = vrcp.f32 %v4361_v55  ;;  %v4315_v30 = vsel %vm4314_vm8, %v8553_v13, %v4313_v27  ;;  %v4322_v11 = vsel %vm4321_vm9, %v8574_v1, %v4320_v54  ;;  %v6535_v3 = vpop.eup %6534 }
 0x366   : > { %v4447_v19 = vmul.f32 1.442695, %v4428_v58  ;;  %v8660_v34 = vmul.f32 %v8590_v37, %v4375_v57  ;;  %6548 = vrcp.f32 %v4362_v48  ;;  %v4318_v49 = vsel %vm4316_vm10, %v4317_v59, %v4315_v30  ;;  %v8713_v30 = vpop.xlane.xlu0 %4240 }
 0x367   : > { %v6537_v2 = vpop.eup %6536  ;;  %v8665_v20 = vmul.f32 %v8590_v37, %v4379_v63  ;;  %6550 = vrcp.f32 %v4363_v26  ;;  %v4364_v17 = vmax.f32 %v4318_v49, 1e-12  ;;  %v4325_v15 = vsel %vm4323_vm11, %v4324_v5, %v4322_v11 }
 0x368   : > { %v6539_v32 = vpop.eup %6538  ;;  %6552 = vpow2.f32 %v4447_v19  ;;  %v4427_v45 = vsub.f32 0.0, %v8660_v34  ;;  %v4381_v4 = vmul.f32 %v6537_v2, %v8473_v61  ;;  %v4365_v22 = vmax.f32 %v4325_v15, 1e-12 }
 0x369   : > { %v6541_v13 = vpop.eup %6540  ;;  %v4429_v59 = vsub.f32 0.0, %v8665_v20  ;;  %v4383_v50 = vmul.f32 %v6539_v32, %v8480_v24  ;;  %6554 = vrcp.f32 %v4364_v17  ;;  %v4327_v10 = vmul.f32 %v6535_v3, %v8585_v23 }
 0x36a   : > { %v4445_v38 = vmul.f32 1.442695, %v4427_v45  ;;  %v8677_v1 = vmul.f32 %v8590_v37, %v4381_v4  ;;  %6556 = vrcp.f32 %v4365_v22  ;;  %v4334_v5 = vmul.f32 %v6541_v13, %v8606_v8 }
 0x36b   : > { %v4449_v56 = vmul.f32 1.442695, %v4429_v59  ;;  %v8681_v61 = vmul.f32 %v8590_v37, %v4383_v50  ;;  %v4329_v18 = vsel %vm4328_vm12, %v8585_v23, %v4327_v10  ;;  %6558 = vrsqrt.f32 %v8671_v6 }
 0x36c   : > { %6560 = vpow2.f32 %v4445_v38  ;;  %v4430_v24 = vsub.f32 0.0, %v8677_v1  ;;  %v4332_v28 = vsel %vm4330_vm13, %v4331_v39, %v4329_v18  ;;  %v4336_v14 = vsel %vm4335_vm14, %v8606_v8, %v4334_v5 }
 0x36d   : > { %v6543_v12 = vpop.eup %6542  ;;  %6562 = vpow2.f32 %v4449_v56  ;;  %v4431_v35 = vsub.f32 0.0, %v8681_v61  ;;  %v4366_v33 = vmax.f32 %v4332_v28, 1e-12  ;;  %v4339_v9 = vsel %vm4337_vm15, %v4338_v52, %v4336_v14 }
 0x36e   : > { %v6545_v55 = vpop.eup %6544  ;;  %v4474_v42 = vadd.f32 1.0, %v6543_v12  ;;  %v4451_v40 = vmul.f32 1.442695, %v4430_v24  ;;  %v4367_v46 = vmax.f32 %v4339_v9, 1e-12  ;;  %vm4342_vm0 = vcmp.eq.f32.partialorder %v8671_v6, inf }
 0x36f   : > { %v6547_v51 = vpop.eup %6546  ;;  %v4473_v29 = vadd.f32 1.0, %v6545_v55  ;;  %v4453_v48 = vmul.f32 1.442695, %v4431_v35  ;;  %6564 = vrcp.f32 %v4366_v33  ;;  %v4345_v19 = vand.u32 2147483648, %v8671_v6 }
 0x370   : > { %v6549_v23 = vpop.eup %6548  ;;  %6566 = vrcp.f32 %v4474_v42  ;;  %v4385_v39 = vmul.f32 %v6547_v51, %v8483_v60  ;;  %vm4344_vm2 = vcmp.eq.f32.partialorder %v8671_v6, 0.0  ;;  %vm4349_vm3 = vcmp.eq.f32.partialorder %v8713_v30, inf }
 0x371   : > { %v6551_v53 = vpop.eup %6550  ;;  %6568 = vrcp.f32 %v4473_v29  ;;  %v4387_v26 = vmul.f32 %v6549_v23, %v8490_v44  ;;  %v9428_v29 = vld [vmem:[#allocation33_spill] sm:$0xff]  ;;  %vm4351_vm4 = vcmp.eq.f32.partialorder %v8713_v30, 0.0 }
 0x372   : > { %v6553_v27 = vpop.eup %6552  ;;  %6570 = vpow2.f32 %v4451_v40  ;;  %v8701_v8 = vmul.f32 %v8590_v37, %v4385_v39  ;;  %v4389_v54 = vmul.f32 %v6551_v53, %v8493_v7 }
 0x373   : > { %v6555_v47 = vpop.eup %6554  ;;  %v4476_v58 = vadd.f32 1.0, %v6553_v27  ;;  %6572 = vpow2.f32 %v4453_v48  ;;  %v8705_v57 = vmul.f32 %v8590_v37, %v4387_v26 }
 0x374   : > { %v6557_v60 = vpop.eup %6556  ;;  %v4432_v52 = vsub.f32 0.0, %v8701_v8  ;;  %v8710_v44 = vmul.f32 %v8590_v37, %v4389_v54  ;;  %v4391_v63 = vmul.f32 %v6555_v47, %v8500_v16  ;;  %6574 = vrcp.f32 %v4367_v46  ;;  %v9429_v47 = vld [vmem:[#allocation43_spill] sm:$0xff] }
 0x375   : > { %v6559_v7 = vpop.eup %6558  ;;  %6576 = vrcp.f32 %v4476_v58  ;;  %v4433_v11 = vsub.f32 0.0, %v8705_v57  ;;  %v4393_v3 = vmul.f32 %v6557_v60, %v8503_v21 }
 0x376   : > { %v6561_v49 = vpop.eup %6560  ;;  %v4455_v2 = vmul.f32 1.442695, %v4432_v52  ;;  %v4434_v17 = vsub.f32 0.0, %v8710_v44  ;;  %v8721_v15 = vmul.f32 %v8590_v37, %v4391_v63  ;;  %v4341_v16 = vmul.f32 %v6559_v7, %v8671_v6 }
 0x377   : > { %v6563_v32 = vpop.eup %6562  ;;  %v4475_v45 = vadd.f32 1.0, %v6561_v49  ;;  %v4457_v4 = vmul.f32 1.442695, %v4433_v11  ;;  %v8725_v22 = vmul.f32 %v8590_v37, %v4393_v3  ;;  %6578 = vrsqrt.f32 %v8713_v30 }
 0x378   : > { %v4477_v21 = vadd.f32 1.0, %v6563_v32  ;;  %6580 = vpow2.f32 %v4455_v2  ;;  %v4459_v13 = vmul.f32 1.442695, %v4434_v17  ;;  %v4435_v59 = vsub.f32 0.0, %v8721_v15  ;;  %v9430_v32 = vld [vmem:[#allocation30_spill] sm:$0xff] }
 0x379   : > { %v6565_v50 = vpop.eup %6564  ;;  %6582 = vrcp.f32 %v4475_v45  ;;  %v4436_v10 = vsub.f32 0.0, %v8725_v22  ;;  %v4343_v38 = vsel %vm4342_vm0, %v8671_v6, %v4341_v16  ;;  %v9427_v6 = vld [vmem:[#allocation38_spill] sm:$0xff] }
 0x37a   : > { %v6567_v5 = vpop.eup %6566  ;;  %6584 = vrcp.f32 %v4477_v21  ;;  %v4461_v56 = vmul.f32 1.442695, %v4435_v59  ;;  %v4395_v18 = vmul.f32 %v6565_v50, %v8510_v36  ;;  %v4346_v24 = vsel %vm4344_vm2, %v4345_v19, %v4343_v38 }
 0x37b   : > { %v6569_v28 = vpop.eup %6568  ;;  %v4522_v14 = vmul.f32 %v6567_v5, %v8609_v0  ;;  %6586 = vpow2.f32 %v4457_v4  ;;  %v4463_v12 = vmul.f32 1.442695, %v4436_v10  ;;  %v4368_v51 = vmax.f32 %v4346_v24, 1e-12 }
 0x37c   : > { %v6571_v35 = vpop.eup %6570  ;;  %v4521_v33 = vmul.f32 %v6569_v28, %v8615_v25  ;;  %6588 = vpow2.f32 %v4459_v13  ;;  %v8740_v9 = vmul.f32 %v8590_v37, %v4395_v18  ;;  %v9431_v13 = vld [vmem:[#allocation44_spill] sm:$0xff] }
 0x37d   : > { %v6573_v55 = vpop.eup %6572  ;;  %v4588_v42 = vmul.f32 %v9427_v6, %v4522_v14  ;;  %v4478_v40 = vadd.f32 1.0, %v6571_v35  ;;  %6590 = vpow2.f32 %v4461_v56  ;;  %v9432_v14 = vld [vmem:[#allocation52_spill] sm:$0xff] }
 0x37e   : > { %v6575_v36 = vpop.eup %6574  ;;  %v4587_v48 = vmul.f32 %v9428_v29, %v4521_v33  ;;  %v4479_v23 = vadd.f32 1.0, %v6573_v55  ;;  %6592 = vpow2.f32 %v4463_v12  ;;  %v4437_v0 = vsub.f32 0.0, %v8740_v9  ;;  %v9433_v33 = vld [vmem:[#allocation53_spill] sm:$0xff] }
 0x37f   : > { %v6577_v39 = vpop.eup %6576  ;;  %4604 = vst [vmem:[%s8745_s7 + $0x8] sm:$0xff] %v4588_v42  ;;  %6594 = vrcp.f32 %v4478_v40  ;;  %v4397_v25 = vmul.f32 %v6575_v36, %v8513_v43  ;;  %v9434_v29 = vld [vmem:[#allocation61_spill] sm:$0xff] }
 0x380   : > { %4603 = vst [vmem:[%s8745_s7] sm:$0xff] %v4587_v48  ;;  %v4524_v46 = vmul.f32 %v6577_v39, %v8639_v62  ;;  %6596 = vrcp.f32 %v4479_v23  ;;  %v4465_v53 = vmul.f32 1.442695, %v4437_v0  ;;  %v4352_v62 = vand.u32 2147483648, %v8713_v30 }
 0x381   : > { %v6579_v26 = vpop.eup %6578  ;;  %v8752_v27 = vmul.f32 %v8590_v37, %v4397_v25  ;;  %6598 = vrcp.f32 %v4368_v51 }
 0x382   : > { %v6581_v54 = vpop.eup %6580  ;;  %v4590_v58 = vmul.f32 %v9429_v47, %v4524_v46  ;;  %6600 = vpow2.f32 %v4465_v53  ;;  %v4348_v60 = vmul.f32 %v6579_v26, %v8713_v30  ;;  %v9435_v53 = vld [vmem:[#allocation70_spill] sm:$0xff] }
 0x383   : > { %v6583_v52 = vpop.eup %6582  ;;  %v4480_v63 = vadd.f32 1.0, %v6581_v54  ;;  %v4438_v43 = vsub.f32 0.0, %v8752_v27 }
 0x384   : > { %v6585_v7 = vpop.eup %6584  ;;  %4606 = vst [vmem:[%s8745_s7 + $0x18] sm:$0xff] %v4590_v58  ;;  %v4523_v11 = vmul.f32 %v6583_v52, %v8660_v34  ;;  %v4350_v3 = vsel %vm4349_vm3, %v8713_v30, %v4348_v60  ;;  %v9436_v58 = vld [vmem:[#allocation71_spill] sm:$0xff] }
 0x385   : > { %v6587_v19 = vpop.eup %6586  ;;  %v4525_v49 = vmul.f32 %v6585_v7, %v8665_v20  ;;  %6602 = vrcp.f32 %v4480_v63  ;;  %v4467_v2 = vmul.f32 1.442695, %v4438_v43  ;;  %v4353_v17 = vsel %vm4351_vm4, %v4352_v62, %v4350_v3 }
 0x386   : > { %v6589_v16 = vpop.eup %6588  ;;  %v4589_v45 = vmul.f32 %v9430_v32, %v4523_v11  ;;  %v4481_v4 = vadd.f32 1.0, %v6587_v19  ;;  %v4369_v10 = vmax.f32 %v4353_v17, 1e-12  ;;  %v9439_v19 = vld [vmem:[#allocation91_spill] sm:$0xff]  ;;  %v9440_v32 = vld [vmem:[#allocation92_spill] sm:$0xff] }
 0x387   : > { %v6591_v21 = vpop.eup %6590  ;;  %v4591_v59 = vmul.f32 %v9431_v13, %v4525_v49  ;;  %v4482_v34 = vadd.f32 1.0, %v6589_v16  ;;  %6604 = vpow2.f32 %v4467_v2  ;;  %v9441_v13 = vld [vmem:[#allocation103_spill] sm:$0xff] }
 0x388   : > { %v6593_v50 = vpop.eup %6592  ;;  %4605 = vst [vmem:[%s8745_s7 + $0x10] sm:$0xff] %v4589_v45  ;;  %6606 = vrcp.f32 %v4481_v4  ;;  %v4483_v30 = vadd.f32 1.0, %v6591_v21 }
 0x389   : > { %v6595_v38 = vpop.eup %6594  ;;  %4607 = vst [vmem:[%s8745_s7 + $0x20] sm:$0xff] %v4591_v59  ;;  %6608 = vrcp.f32 %v4482_v34  ;;  %v4484_v20 = vadd.f32 1.0, %v6593_v50  ;;  %v9442_v34 = vld [vmem:[#allocation94_spill] sm:$0xff] }
 0x38a   : > { %v6597_v5 = vpop.eup %6596  ;;  %v4526_v56 = vmul.f32 %v6595_v38, %v8677_v1  ;;  %6610 = vrcp.f32 %v4483_v30  ;;  %v4569_v50 = vrot.slane %v9442_v34, 1 }
 0x38b   : > { %v6599_v18 = vpop.eup %6598  ;;  %v4527_v24 = vmul.f32 %v6597_v5, %v8681_v61  ;;  %6612 = vrcp.f32 %v4484_v20 }
 0x38c   : > { %v6601_v28 = vpop.eup %6600  ;;  %v4592_v12 = vmul.f32 %v9432_v14, %v4526_v56  ;;  %v4399_v35 = vmul.f32 %v6599_v18, %v8520_v31  ;;  %6614 = vrcp.f32 %v4369_v10  ;;  %v9443_v10 = vld [vmem:[#allocation100_spill] sm:$0xff] }
 0x38d   : > { %v4593_v55 = vmul.f32 %v9433_v33, %v4527_v24  ;;  %v4485_v6 = vadd.f32 1.0, %v6601_v28  ;;  %v9444_v38 = vrot.slane %v9443_v10, 1 }
 0x38e   : > { %4608 = vst [vmem:[%s8745_s7 + $0x28] sm:$0xff] %v4592_v12  ;;  %v4423_v42 = vmul.f32 %v8590_v37, %v4399_v35 }
 0x38f   : > { %v6603_v40 = vpop.eup %6602  ;;  %4609 = vst [vmem:[%s8745_s7 + $0x30] sm:$0xff] %v4593_v55  ;;  %6616 = vrcp.f32 %v4485_v6  ;;  %v4570_v20 = vsel %vm424_vm1, %v9444_v38, %v4569_v50 }
 0x390   : > { %v4528_v1 = vmul.f32 %v6603_v40, %v8701_v8  ;;  %v4439_v61 = vsub.f32 0.0, %v4423_v42 }
 0x391   : > { %v6605_v51 = vpop.eup %6604 }
 0x392   : > { %v6607_v36 = vpop.eup %6606  ;;  %v4594_v48 = vmul.f32 %v9434_v29, %v4528_v1  ;;  %v4486_v31 = vadd.f32 1.0, %v6605_v51  ;;  %v4469_v23 = vmul.f32 1.442695, %v4439_v61 }
 0x393   : > { %v6609_v0 = vpop.eup %6608  ;;  %v4529_v39 = vmul.f32 %v6607_v36, %v8705_v57  ;;  %v9437_v57 = vld [vmem:[#allocation83_spill] sm:$0xff] }
 0x394   : > { %v6611_v25 = vpop.eup %6610  ;;  %4610 = vst [vmem:[%s8745_s7 + $0x38] sm:$0xff] %v4594_v48  ;;  %v4530_v46 = vmul.f32 %v6609_v0, %v8710_v44  ;;  %6618 = vrcp.f32 %v4486_v31  ;;  %v9438_v44 = vld [vmem:[#allocation84_spill] sm:$0xff] }
 0x395   : > { %v6613_v8 = vpop.eup %6612  ;;  %v4595_v26 = vmul.f32 %v9435_v53, %v4529_v39  ;;  %v4531_v54 = vmul.f32 %v6611_v25, %v8721_v15  ;;  %6620 = vpow2.f32 %v4469_v23 }
 0x396   : > { %v6615_v47 = vpop.eup %6614  ;;  %v4596_v60 = vmul.f32 %v9436_v58, %v4530_v46  ;;  %v4532_v52 = vmul.f32 %v6613_v8, %v8725_v22 }
 0x397   : > { %4611 = vst [vmem:[%s8745_s7 + $0x40] sm:$0xff] %v4595_v26  ;;  %v4597_v63 = vmul.f32 %v9437_v57, %v4531_v54  ;;  %v4401_v43 = vmul.f32 %v6615_v47, %v8523_v41 }
 0x398   : > { %4612 = vst [vmem:[%s8745_s7 + $0x48] sm:$0xff] %v4596_v60  ;;  %v4598_v62 = vmul.f32 %v9438_v44, %v4532_v52 }
 0x399   : > { %v6617_v7 = vpop.eup %6616  ;;  %4613 = vst [vmem:[%s8745_s7 + $0x50] sm:$0xff] %v4597_v63  ;;  %v4424_v15 = vmul.f32 %v8590_v37, %v4401_v43 }
 0x39a   : > { %4614 = vst [vmem:[%s8745_s7 + $0x58] sm:$0xff] %v4598_v62  ;;  %v4533_v11 = vmul.f32 %v6617_v7, %v8740_v9 }
 0x39b   : > { %v4440_v3 = vsub.f32 0.0, %v4424_v15 }
 0x39c   : > { %v4599_v49 = vmul.f32 %v9439_v19, %v4533_v11 }
 0x39d   : > { %v4471_v22 = vmul.f32 1.442695, %v4440_v3 }
 0x39e   : > { %v6619_v2 = vpop.eup %6618  ;;  %4615 = vst [vmem:[%s8745_s7 + $0x60] sm:$0xff] %v4599_v49 }
 0x39f   : > { %v6621_v41 = vpop.eup %6620  ;;  %v4534_v17 = vmul.f32 %v6619_v2, %v8752_v27  ;;  %6622 = vpow2.f32 %v4471_v22 }
 0x3a0   : > { %v4487_v16 = vadd.f32 1.0, %v6621_v41 }
 0x3a1   : > { %v4600_v45 = vmul.f32 %v9440_v32, %v4534_v17 }
 0x3a2   : > { %6624 = vrcp.f32 %v4487_v16 }
 0x3a3   : > { %4616 = vst [vmem:[%s8745_s7 + $0x68] sm:$0xff] %v4600_v45 }
 0x3a9   : > { %v6623_v37 = vpop.eup %6622 }
 0x3aa   : > { %v4488_v9 = vadd.f32 1.0, %v6623_v37 }
 0x3ac   : > { %v6625_v4 = vpop.eup %6624  ;;  %6626 = vrcp.f32 %v4488_v9 }
 0x3ad   : > { %v4535_v21 = vmul.f32 %v6625_v4, %v4423_v42 }
 0x3af   : > { %v4601_v59 = vmul.f32 %v9441_v13, %v4535_v21 }
 0x3b1   : > { %4617 = vst [vmem:[%s8745_s7 + $0x70] sm:$0xff] %v4601_v59 }
 0x3b6   : > { %v6627_v27 = vpop.eup %6626 }
 0x3b7   : > { %v4536_v30 = vmul.f32 %v6627_v27, %v4424_v15 }
 0x3b9   : > { %v4602_v5 = vmul.f32 %v4570_v20, %v4536_v30 }
 0x3bb   : > { %4618 = vst [vmem:[%s8745_s7 + $0x78] sm:$0xff] %v4602_v5 }
 0x3bc   : > { %6641 = shalt.err (!%p6638_p3)
}
 0x3bd   : > { %s6642_s30 = scalar_lea.hbm %s8810_s13, 2048  ;;  %s6646_s25 = scalar_lea.hbm %s8863_s5, 4096 }
 0x3be   : > { %p6643_p4 = scmp.ne.s32.totalorder %s8810_s13, %s6642_s30  ;;  %p6647_p9 = scmp.lt.u32.totalorder %s8810_s13, %s8863_s5 }
 0x3bf   : > { %p6648_p10 = scmp.lt.u32.totalorder %s6646_s25, %s6642_s30  ;;  %p6650_p12 = scmp.lt.u32.totalorder %s6642_s30, %s8810_s13 }
 0x3c0   : > { %p6644_p7 = pnand %p6643_p4, %p6764_p5 }
 0x3c1   : > { %p6649_p11 = por %p6648_p10, %p6647_p9 }
 0x3c2   : > { %p6645_p8 = pneg %p6644_p7 }
 0x3c3   : > { %p6651_p13 = por %p6650_p12, %p6649_p11 }
 0x3c5   : > { %p6652_p0 = pnand %p6651_p13, %p6645_p8 }
 0x3c7   : > { %6655 = shalt.err (!%p6652_p0)
}
 0x3c8   : > { %s6694_s7 = smov 128   ;;  %s6695_s8 = smov 8  }
 0x3c9   : > { %6456 = dma.vmem_to_hbm [thread:$0]  (%p6764_p5), %s8812_s9, 2048, %s8810_s13, %s8817_s22, %s6694_s7, %s6694_s7, %s6695_s8  }
 0x3ca PF: > { %p6462_p1 = scmp.ge.s32.totalorder %s6690_s21, 2  ;;  %s4649_s11 = sand.u32 1, %s6678_s18  }
 0x3cb   : > { %s4650_s12 = scalar_lea.sflag [#allocation3], %s4649_s11 }
 0x3cc   : > { %p6459_p2 = pnand %p6462_p1, %p6768_p6 }
 0x3ce   : > { %6673 = dma.done.wait (!%p6459_p2), %s4650_s12, 2048  }
 0x3cf   : > { %6675 = vsyncadd (!%p6459_p2), %s4650_s12, 4294965248  ;;  %p15_p3 = scmp.ge.s32.totalorder %s6751_s24, 4   ;;  %s9445_s18 = smov %s6682_s19 }
 0x3d0   : > { %s9446_s19 = smov %s6686_s20  ;;  %s9447_s20 = smov %s6762_s27 }
 0x3d1   : > { %s9448_s21 = smov %s6751_s24  ;;  %17 = sbr.rel (!%p15_p3) target bundleno = 3 (0x3), region = 80 }
 0x3d8   :  { %4655 = vsyncpa [#allocation3], 1 }
 0x3d9   :  { %4657 = vsyncpa [#allocation3 + $0x1], 1 }

</bundles_post_ra>
